<compile_context>
chip_gen: v5e
topology: v5e:2x2
jax: 0.10.0
libtpu: 0.0.40
codegen_flags: <defaults>
</compile_context>

<pallas_src>
import functools
import numpy as np
import jax
import jax.numpy as jnp
from jax import lax
from jax.experimental import pallas as pl
from jax.experimental.pallas import tpu as pltpu

LRELU_SLOPE = 0.2
KW = 4            # kernel size used by NoNormDiscriminator
PADW = 2          # int(np.ceil((4 - 1) / 2))

TM_TARGET = 512            # M-tile target (review: 512-1024; 512 also fits v5e)
TK_TARGET = 2048           # K-tile cap (X tile stays <= 2 MiB/buffer at tm=512)
VMEM_BUDGET = 40 << 20     # working-set target; safe under v7x's 64 MiB physical
VMEM_LIMIT_CAP = 56 << 20  # never request more scoped VMEM than this


def _round_up(x, m):
    return ((x + m - 1) // m) * m


# ---------------------------------------------------------------------------
# Pallas kernel: Y = X @ W + b with fused activation.
# Grid = (M-blocks, K-blocks); W is VMEM-resident (full (K, Np) block, constant
# index map) and sliced per K step inside the kernel; f32 accumulator scratch.
# ---------------------------------------------------------------------------
def _conv_mm_kernel(x_ref, w_ref, b_ref, o_ref, acc_ref, *, tk, k_align, epilogue):
    k = pl.program_id(1)

    @pl.when(k == 0)
    def _():
        acc_ref[...] = jnp.zeros_like(acc_ref)

    k0 = pl.multiple_of(k * tk, k_align)
    acc_ref[...] += jnp.dot(x_ref[...], w_ref[pl.ds(k0, tk), :],
                            preferred_element_type=jnp.float32)

    @pl.when(k == pl.num_programs(1) - 1)
    def _():
        y = acc_ref[...] + b_ref[...]
        if epilogue == "lrelu":
            y = jnp.where(y >= 0, y, LRELU_SLOPE * y)
        elif epilogue == "sigmoid":
            y = jax.nn.sigmoid(y)
        o_ref[...] = y.astype(o_ref.dtype)


def _pick_tiles(M, K, Np):
    """tn = Np (X streamed once). tk divides or equals K (never-ragged reduction).
    tm targets 512 but keeps at least 2 M-blocks when possible (v7x megacore)."""
    if K <= TK_TARGET:
        tk = K
    else:
        divs = [t for t in (2048, 1024, 512, 256, 128) if K % t == 0]
        tk = max(divs) if divs else K
    half = _round_up((M + 1) // 2, 16)        # 16 = bf16 sublane packing
    tm = max(16, min(TM_TARGET, half))
    return tm, tk, Np


def _vmem_estimate(tm, tk, K, Np, out_itemsize):
    x_bytes = 2 * tm * tk * 2          # double-buffered bf16 X tile
    w_bytes = 2 * K * Np * 2           # resident W (2 buffers allocated, 1 filled)
    b_bytes = 2 * Np * 4
    o_bytes = 2 * tm * Np * out_itemsize
    acc_bytes = 2 * tm * Np * 4        # f32 accumulator + dot intermediate
    return x_bytes + w_bytes + b_bytes + o_bytes + acc_bytes


def conv_matmul(x, w, b, *, epilogue, out_dtype):
    """x: (M, K) bf16, w: (K, Np) bf16 (Np = round_up(Cout,128)), b: (1, Np) f32."""
    M, K = x.shape
    Kw, Np = w.shape
    assert Kw == K
    tm, tk, tn = _pick_tiles(M, K, Np)

    out_itemsize = np.dtype(out_dtype).itemsize
    while _vmem_estimate(tm, tk, K, Np, out_itemsize) > VMEM_BUDGET and tm > 32:
        tm = max(32, _round_up(tm // 2, 16))
    vmem_limit = int(min(VMEM_LIMIT_CAP,
                         _vmem_estimate(tm, tk, K, Np, out_itemsize) + (16 << 20)))

    k_align = next(a for a in (512, 256, 128, 64, 32, 16, 8, 1) if tk % a == 0)
    grid = (pl.cdiv(M, tm), K // tk)

    return pl.pallas_call(
        functools.partial(_conv_mm_kernel, tk=tk, k_align=k_align, epilogue=epilogue),
        out_shape=jax.ShapeDtypeStruct((M, Np), out_dtype),
        grid_spec=pltpu.PrefetchScalarGridSpec(
            num_scalar_prefetch=0,
            grid=grid,
            in_specs=[
                pl.BlockSpec((tm, tk), lambda i, k: (i, k)),    # X: streamed, read once
                pl.BlockSpec((K, Np), lambda i, k: (0, 0)),     # W: resident, DMA'd once
                pl.BlockSpec((1, Np), lambda i, k: (0, 0)),     # bias: resident
            ],
            out_specs=pl.BlockSpec((tm, tn), lambda i, k: (i, 0)),
            scratch_shapes=[pltpu.VMEM((tm, tn), jnp.float32)],
        ),
        compiler_params=pltpu.CompilerParams(
            dimension_semantics=("parallel", "arbitrary"),
            vmem_limit_bytes=vmem_limit),
    )(x, w, b)


# ---------------------------------------------------------------------------
# Glue: im2col (pure indexing / reshape), parameter init & one-time prep
# ---------------------------------------------------------------------------
def im2col(x_nhwc, kh, kw, stride, pad):
    N, H, W, C = x_nhwc.shape
    xp = jnp.pad(x_nhwc, ((0, 0), (pad, pad), (pad, pad), (0, 0)))
    Ho = (H + 2 * pad - kh) // stride + 1
    Wo = (W + 2 * pad - kw) // stride + 1
    cols = []
    for di in range(kh):
        for dj in range(kw):
            cols.append(xp[:, di:di + stride * (Ho - 1) + 1:stride,
                           dj:dj + stride * (Wo - 1) + 1:stride, :])
    patches = jnp.stack(cols, axis=3)                 # (N, Ho, Wo, kh*kw, C)
    return patches.reshape(N * Ho * Wo, kh * kw * C), N, Ho, Wo


def init_params(key, input_nc, ndf=64, n_layers=3):
    """Mirrors NoNormDiscriminator: conv(+bias) + LeakyReLU per layer, no norm,
    final conv to 1 channel without activation."""
    cfgs = [dict(cin=input_nc, cout=ndf, stride=2, act=True)]
    nf_mult = 1
    for n in range(1, n_layers):
        nf_prev, nf_mult = nf_mult, min(2 ** n, 8)
        cfgs.append(dict(cin=ndf * nf_prev, cout=ndf * nf_mult, stride=2, act=True))
    nf_prev, nf_mult = nf_mult, min(2 ** n_layers, 8)
    cfgs.append(dict(cin=ndf * nf_prev, cout=ndf * nf_mult, stride=1, act=True))
    cfgs.append(dict(cin=ndf * nf_mult, cout=1, stride=1, act=False))

    params = []
    for c in cfgs:
        key, k1, k2 = jax.random.split(key, 3)
        bound = 1.0 / np.sqrt(c["cin"] * KW * KW)
        params.append(dict(
            w=jax.random.uniform(k1, (c["cout"], c["cin"], KW, KW),
                                 jnp.float32, -bound, bound),
            b=jax.random.uniform(k2, (c["cout"],), jnp.float32, -bound, bound),
            stride=c["stride"], act=c["act"]))
    return params


def prepare_params(params):
    """One-time: reshape PyTorch OIHW weights to (K, Cout), cast bf16, pad Cout
    to a lane multiple of 128, build (1, Np) f32 bias rows."""
    prepped = []
    for p in params:
        cout, cin = p["w"].shape[0], p["w"].shape[1]
        K = KW * KW * cin
        Np = _round_up(cout, 128)
        wmat = jnp.transpose(p["w"], (2, 3, 1, 0)).reshape(K, cout)
        wmat = jnp.pad(wmat.astype(jnp.bfloat16), ((0, 0), (0, Np - cout)))
        brow = jnp.pad(p["b"], (0, Np - cout)).reshape(1, Np).astype(jnp.float32)
        prepped.append(dict(w=wmat, b=brow, cout=cout,
                            stride=p["stride"], act=p["act"]))
    return prepped


def nonorm_discriminator(x_nchw, prepped, use_sigmoid=False):
    x = jnp.transpose(x_nchw, (0, 2, 3, 1)).astype(jnp.bfloat16)   # NCHW -> NHWC
    n_layers = len(prepped)
    for li, p in enumerate(prepped):
        cols, N, Ho, Wo = im2col(x, KW, KW, p["stride"], PADW)
        last = li == n_layers - 1
        if p["act"]:
            epi = "lrelu"
        else:
            epi = "sigmoid" if (last and use_sigmoid) else "none"
        out_dtype = jnp.float32 if last else jnp.bfloat16
        y = conv_matmul(cols, p["w"], p["b"], epilogue=epi, out_dtype=out_dtype)
        # Drop padded Cout lanes (zeros); XLA fuses this slice into the next
        # layer's im2col pad/gather for intermediate layers.
        x = y[:, :p["cout"]].reshape(N, Ho, Wo, p["cout"])
    return jnp.transpose(x, (0, 3, 1, 2))                          # NHWC -> NCHW


# ---------------------------------------------------------------------------
# References for correctness checks
# ---------------------------------------------------------------------------
def _conv_layer_ref(x, p, lhs_dtype):
    y = lax.conv_general_dilated(
        x.astype(lhs_dtype), p["w"].astype(lhs_dtype),
        window_strides=(p["stride"], p["stride"]),
        padding=((PADW, PADW), (PADW, PADW)),
        dimension_numbers=("NCHW", "OIHW", "NCHW"),
        preferred_element_type=jnp.float32)
    y = y + p["b"][None, :, None, None]
    if p["act"]:
        y = jnp.where(y >= 0, y, LRELU_SLOPE * y)
    return y


def reference_forward_f32(x_nchw, params):
    """Full f32 reference — matches the PyTorch module semantics exactly."""
    x = x_nchw
    for p in params:
        x = _conv_layer_ref(x, p, jnp.float32)
    return x


def reference_forward_bf16(x_nchw, params):
    """Matched-precision reference: bf16 operands, f32 accumulation, bf16
    intermediate activations (same numerics as the Pallas pipeline)."""
    x = x_nchw
    for li, p in enumerate(params):
        y = _conv_layer_ref(x, p, jnp.bfloat16)
        x = y if li == len(params) - 1 else y.astype(jnp.bfloat16)
    return x


if __name__ == "__main__":
    key = jax.random.PRNGKey(0)
    kx, kp = jax.random.split(key)

    # small shapes consistent with the module: batch=2, input_nc=4, 16x16, ndf=8
    input_nc, ndf, n_layers = 4, 8, 3
    x = jax.random.normal(kx, (2, input_nc, 16, 16), jnp.float32)
    params = init_params(kp, input_nc, ndf=ndf, n_layers=n_layers)
    prepped = prepare_params(params)

    fwd = jax.jit(lambda xx: nonorm_discriminator(xx, prepped, use_sigmoid=False))
    out = jax.block_until_ready(fwd(x))

    ref_match = jax.block_until_ready(reference_forward_bf16(x, params))
    ref_f32 = jax.block_until_ready(reference_forward_f32(x, params))

    assert out.shape == ref_f32.shape, (out.shape, ref_f32.shape)   # (2, 1, 5, 5)
    # tight check against the matched-precision (bf16-operand) reference
    np.testing.assert_allclose(np.asarray(out), np.asarray(ref_match),
                               rtol=3e-2, atol=3e-2)
    # loose sanity check against the exact f32 module semantics
    np.testing.assert_allclose(np.asarray(out), np.asarray(ref_f32),
                               rtol=1e-1, atol=1e-1)
    print("KERNEL_OK")
</pallas_src>

<mosaic_0001>
module attributes {stable_mosaic.version = 11 : i64} {
  func.func @_conv_mm_kernel(%arg0: i32, %arg1: i32, %arg2: memref<96x64xbf16, #tpu.memory_space<vmem>>, %arg3: memref<64x128xbf16, #tpu.memory_space<vmem>>, %arg4: memref<1x128xf32, #tpu.memory_space<vmem>>, %arg5: memref<96x128xbf16, #tpu.memory_space<vmem>>, %arg6: memref<96x128xf32, #tpu.memory_space<vmem>>) attributes {dimension_semantics = [#tpu.dimension_semantics<parallel>, #tpu.dimension_semantics<arbitrary>], iteration_bounds = array<i64: 2, 1>, scalar_prefetch = 0 : i64, scratch_operands = 1 : i64, tpu.core_type = #tpu.core_type<tc>, window_params = [{transform_indices = @transform_0, window_bounds = array<i64: 96, 64>}, {pipeline_mode = #tpu.pipeline_mode<synchronous>, transform_indices = @transform_1, window_bounds = array<i64: 64, 128>}, {pipeline_mode = #tpu.pipeline_mode<synchronous>, transform_indices = @transform_2, window_bounds = array<i64: 1, 128>}, {transform_indices = @transform_3, window_bounds = array<i64: 96, 128>}]} {
    %c0_i32 = arith.constant 0 : i32
    %0 = arith.cmpi eq, %arg1, %c0_i32 : i32
    %1 = arith.extui %0 : i1 to i32
    %c0_i32_0 = arith.constant 0 : i32
    %2 = arith.cmpi ne, %1, %c0_i32_0 : i32
    scf.if %2 {
      %cst_9 = arith.constant 0.000000e+00 : f32
      %15 = vector.broadcast %cst_9 : f32 to vector<96x128xf32>
      %c0_10 = arith.constant 0 : index
      %c0_11 = arith.constant 0 : index
      %16 = vector.load %arg6[%c0_10, %c0_11] : memref<96x128xf32, #tpu.memory_space<vmem>>, vector<96x128xf32>
      tpu.vector_store %arg6[%c0_10, %c0_11], %15 {strides = array<i32>} : memref<96x128xf32, #tpu.memory_space<vmem>>, vector<96x128xf32>,
    } else {
    }
    %c64_i32 = arith.constant 64 : i32
    %3 = arith.muli %arg1, %c64_i32 : i32
    %4 = tpu.assume_multiple %3, 64 : i32
    %c0 = arith.constant 0 : index
    %c0_1 = arith.constant 0 : index
    %5 = vector.load %arg6[%c0, %c0_1] : memref<96x128xf32, #tpu.memory_space<vmem>>, vector<96x128xf32>
    %c0_2 = arith.constant 0 : index
    %c0_3 = arith.constant 0 : index
    %6 = vector.load %arg2[%c0_2, %c0_3] : memref<96x64xbf16, #tpu.memory_space<vmem>>, vector<96x64xbf16>
    %7 = arith.index_cast %4 : i32 to index
    %c0_4 = arith.constant 0 : index
    %8 = vector.load %arg3[%7, %c0_4] : memref<64x128xbf16, #tpu.memory_space<vmem>>, vector<64x128xbf16>
    %cst = arith.constant dense<0.000000e+00> : vector<96x128xf32>
    %9 = tpu.matmul %6, %8, %cst {dimension_numbers = #tpu.dot_dimension_numbers<[1], [0], [0], [1], [0, 0, 1, 1], [], []>} : vector<96x64xbf16>, vector<64x128xbf16>, vector<96x128xf32> -> vector<96x128xf32>
    %10 = arith.addf %5, %9 : vector<96x128xf32>
    %c0_5 = arith.constant 0 : index
    %c0_6 = arith.constant 0 : index
    %11 = vector.load %arg6[%c0_5, %c0_6] : memref<96x128xf32, #tpu.memory_space<vmem>>, vector<96x128xf32>
    tpu.vector_store %arg6[%c0_5, %c0_6], %10 {strides = array<i32>} : memref<96x128xf32, #tpu.memory_space<vmem>>, vector<96x128xf32>,
    %c0_i32_7 = arith.constant 0 : i32
    %12 = arith.cmpi eq, %arg1, %c0_i32_7 : i32
    %13 = arith.extui %12 : i1 to i32
    %c0_i32_8 = arith.constant 0 : i32
    %14 = arith.cmpi ne, %13, %c0_i32_8 : i32
    scf.if %14 {
      %c0_9 = arith.constant 0 : index
      %c0_10 = arith.constant 0 : index
      %15 = vector.load %arg6[%c0_9, %c0_10] : memref<96x128xf32, #tpu.memory_space<vmem>>, vector<96x128xf32>
      %c0_11 = arith.constant 0 : index
      %c0_12 = arith.constant 0 : index
      %16 = vector.load %arg4[%c0_11, %c0_12] : memref<1x128xf32, #tpu.memory_space<vmem>>, vector<1x128xf32>
      %17 = vector.broadcast %16 : vector<1x128xf32> to vector<96x128xf32>
      %18 = arith.addf %15, %17 : vector<96x128xf32>
      %cst_13 = arith.constant 0.000000e+00 : f32
      %19 = vector.broadcast %cst_13 : f32 to vector<96x128xf32>
      %20 = arith.cmpf oge, %18, %19 : vector<96x128xf32>
      %cst_14 = arith.constant 2.000000e-01 : f32
      %21 = vector.broadcast %cst_14 : f32 to vector<96x128xf32>
      %22 = arith.mulf %21, %18 : vector<96x128xf32>
      %23 = arith.select %20, %18, %22 : vector<96x128xi1>, vector<96x128xf32>
      %24 = arith.truncf %23 : vector<96x128xf32> to vector<96x128xbf16>
      %c0_15 = arith.constant 0 : index
      %c0_16 = arith.constant 0 : index
      %25 = vector.load %arg5[%c0_15, %c0_16] : memref<96x128xbf16, #tpu.memory_space<vmem>>, vector<96x128xbf16>
      tpu.vector_store %arg5[%c0_15, %c0_16], %24 {strides = array<i32>} : memref<96x128xbf16, #tpu.memory_space<vmem>>, vector<96x128xbf16>,
    } else {
    }
    return
  }
  func.func @transform_0(%arg0: i32, %arg1: i32) -> (i32, i32) {
    %c0_i32 = arith.constant 0 : i32
    return %arg0, %arg1 : i32, i32
  }
  func.func @transform_1(%arg0: i32, %arg1: i32) -> (i32, i32) {
    %c0_i32 = arith.constant 0 : i32
    %c0_i32_0 = arith.constant 0 : i32
    %c0_i32_1 = arith.constant 0 : i32
    return %c0_i32, %c0_i32_0 : i32, i32
  }
  func.func @transform_2(%arg0: i32, %arg1: i32) -> (i32, i32) {
    %c0_i32 = arith.constant 0 : i32
    %c0_i32_0 = arith.constant 0 : i32
    %c0_i32_1 = arith.constant 0 : i32
    return %c0_i32, %c0_i32_0 : i32, i32
  }
  func.func @transform_3(%arg0: i32, %arg1: i32) -> (i32, i32) {
    %c0_i32 = arith.constant 0 : i32
    %c0_i32_0 = arith.constant 0 : i32
    return %arg0, %c0_i32 : i32, i32
  }
}

module attributes {stable_mosaic.version = 11 : i64} {
  func.func @_conv_mm_kernel(%arg0: i32, %arg1: i32, %arg2: memref<32x128xbf16, #tpu.memory_space<vmem>>, %arg3: memref<128x128xbf16, #tpu.memory_space<vmem>>, %arg4: memref<1x128xf32, #tpu.memory_space<vmem>>, %arg5: memref<32x128xbf16, #tpu.memory_space<vmem>>, %arg6: memref<32x128xf32, #tpu.memory_space<vmem>>) attributes {dimension_semantics = [#tpu.dimension_semantics<parallel>, #tpu.dimension_semantics<arbitrary>], iteration_bounds = array<i64: 2, 1>, scalar_prefetch = 0 : i64, scratch_operands = 1 : i64, tpu.core_type = #tpu.core_type<tc>, window_params = [{transform_indices = @transform_0, window_bounds = array<i64: 32, 128>}, {pipeline_mode = #tpu.pipeline_mode<synchronous>, transform_indices = @transform_1, window_bounds = array<i64: 128, 128>}, {pipeline_mode = #tpu.pipeline_mode<synchronous>, transform_indices = @transform_2, window_bounds = array<i64: 1, 128>}, {transform_indices = @transform_3, window_bounds = array<i64: 32, 128>}]} {
    %c0_i32 = arith.constant 0 : i32
    %0 = arith.cmpi eq, %arg1, %c0_i32 : i32
    %1 = arith.extui %0 : i1 to i32
    %c0_i32_0 = arith.constant 0 : i32
    %2 = arith.cmpi ne, %1, %c0_i32_0 : i32
    scf.if %2 {
      %cst_9 = arith.constant 0.000000e+00 : f32
      %15 = vector.broadcast %cst_9 : f32 to vector<32x128xf32>
      %c0_10 = arith.constant 0 : index
      %c0_11 = arith.constant 0 : index
      %16 = vector.load %arg6[%c0_10, %c0_11] : memref<32x128xf32, #tpu.memory_space<vmem>>, vector<32x128xf32>
      tpu.vector_store %arg6[%c0_10, %c0_11], %15 {strides = array<i32>} : memref<32x128xf32, #tpu.memory_space<vmem>>, vector<32x128xf32>,
    } else {
    }
    %c128_i32 = arith.constant 128 : i32
    %3 = arith.muli %arg1, %c128_i32 : i32
    %4 = tpu.assume_multiple %3, 128 : i32
    %c0 = arith.constant 0 : index
    %c0_1 = arith.constant 0 : index
    %5 = vector.load %arg6[%c0, %c0_1] : memref<32x128xf32, #tpu.memory_space<vmem>>, vector<32x128xf32>
    %c0_2 = arith.constant 0 : index
    %c0_3 = arith.constant 0 : index
    %6 = vector.load %arg2[%c0_2, %c0_3] : memref<32x128xbf16, #tpu.memory_space<vmem>>, vector<32x128xbf16>
    %7 = arith.index_cast %4 : i32 to index
    %c0_4 = arith.constant 0 : index
    %8 = vector.load %arg3[%7, %c0_4] : memref<128x128xbf16, #tpu.memory_space<vmem>>, vector<128x128xbf16>
    %cst = arith.constant dense<0.000000e+00> : vector<32x128xf32>
    %9 = tpu.matmul %6, %8, %cst {dimension_numbers = #tpu.dot_dimension_numbers<[1], [0], [0], [1], [0, 0, 1, 1], [], []>} : vector<32x128xbf16>, vector<128x128xbf16>, vector<32x128xf32> -> vector<32x128xf32>
    %10 = arith.addf %5, %9 : vector<32x128xf32>
    %c0_5 = arith.constant 0 : index
    %c0_6 = arith.constant 0 : index
    %11 = vector.load %arg6[%c0_5, %c0_6] : memref<32x128xf32, #tpu.memory_space<vmem>>, vector<32x128xf32>
    tpu.vector_store %arg6[%c0_5, %c0_6], %10 {strides = array<i32>} : memref<32x128xf32, #tpu.memory_space<vmem>>, vector<32x128xf32>,
    %c0_i32_7 = arith.constant 0 : i32
    %12 = arith.cmpi eq, %arg1, %c0_i32_7 : i32
    %13 = arith.extui %12 : i1 to i32
    %c0_i32_8 = arith.constant 0 : i32
    %14 = arith.cmpi ne, %13, %c0_i32_8 : i32
    scf.if %14 {
      %c0_9 = arith.constant 0 : index
      %c0_10 = arith.constant 0 : index
      %15 = vector.load %arg6[%c0_9, %c0_10] : memref<32x128xf32, #tpu.memory_space<vmem>>, vector<32x128xf32>
      %c0_11 = arith.constant 0 : index
      %c0_12 = arith.constant 0 : index
      %16 = vector.load %arg4[%c0_11, %c0_12] : memref<1x128xf32, #tpu.memory_space<vmem>>, vector<1x128xf32>
      %17 = vector.broadcast %16 : vector<1x128xf32> to vector<32x128xf32>
      %18 = arith.addf %15, %17 : vector<32x128xf32>
      %cst_13 = arith.constant 0.000000e+00 : f32
      %19 = vector.broadcast %cst_13 : f32 to vector<32x128xf32>
      %20 = arith.cmpf oge, %18, %19 : vector<32x128xf32>
      %cst_14 = arith.constant 2.000000e-01 : f32
      %21 = vector.broadcast %cst_14 : f32 to vector<32x128xf32>
      %22 = arith.mulf %21, %18 : vector<32x128xf32>
      %23 = arith.select %20, %18, %22 : vector<32x128xi1>, vector<32x128xf32>
      %24 = arith.truncf %23 : vector<32x128xf32> to vector<32x128xbf16>
      %c0_15 = arith.constant 0 : index
      %c0_16 = arith.constant 0 : index
      %25 = vector.load %arg5[%c0_15, %c0_16] : memref<32x128xbf16, #tpu.memory_space<vmem>>, vector<32x128xbf16>
      tpu.vector_store %arg5[%c0_15, %c0_16], %24 {strides = array<i32>} : memref<32x128xbf16, #tpu.memory_space<vmem>>, vector<32x128xbf16>,
    } else {
    }
    return
  }
  func.func @transform_0(%arg0: i32, %arg1: i32) -> (i32, i32) {
    %c0_i32 = arith.constant 0 : i32
    return %arg0, %arg1 : i32, i32
  }
  func.func @transform_1(%arg0: i32, %arg1: i32) -> (i32, i32) {
    %c0_i32 = arith.constant 0 : i32
    %c0_i32_0 = arith.constant 0 : i32
    %c0_i32_1 = arith.constant 0 : i32
    return %c0_i32, %c0_i32_0 : i32, i32
  }
  func.func @transform_2(%arg0: i32, %arg1: i32) -> (i32, i32) {
    %c0_i32 = arith.constant 0 : i32
    %c0_i32_0 = arith.constant 0 : i32
    %c0_i32_1 = arith.constant 0 : i32
    return %c0_i32, %c0_i32_0 : i32, i32
  }
  func.func @transform_3(%arg0: i32, %arg1: i32) -> (i32, i32) {
    %c0_i32 = arith.constant 0 : i32
    %c0_i32_0 = arith.constant 0 : i32
    return %arg0, %c0_i32 : i32, i32
  }
}

module attributes {stable_mosaic.version = 11 : i64} {
  func.func @_conv_mm_kernel(%arg0: i32, %arg1: i32, %arg2: memref<16x256xbf16, #tpu.memory_space<vmem>>, %arg3: memref<256x128xbf16, #tpu.memory_space<vmem>>, %arg4: memref<1x128xf32, #tpu.memory_space<vmem>>, %arg5: memref<16x128xbf16, #tpu.memory_space<vmem>>, %arg6: memref<16x128xf32, #tpu.memory_space<vmem>>) attributes {dimension_semantics = [#tpu.dimension_semantics<parallel>, #tpu.dimension_semantics<arbitrary>], iteration_bounds = array<i64: 2, 1>, scalar_prefetch = 0 : i64, scratch_operands = 1 : i64, tpu.core_type = #tpu.core_type<tc>, window_params = [{transform_indices = @transform_0, window_bounds = array<i64: 16, 256>}, {pipeline_mode = #tpu.pipeline_mode<synchronous>, transform_indices = @transform_1, window_bounds = array<i64: 256, 128>}, {pipeline_mode = #tpu.pipeline_mode<synchronous>, transform_indices = @transform_2, window_bounds = array<i64: 1, 128>}, {transform_indices = @transform_3, window_bounds = array<i64: 16, 128>}]} {
    %c0_i32 = arith.constant 0 : i32
    %0 = arith.cmpi eq, %arg1, %c0_i32 : i32
    %1 = arith.extui %0 : i1 to i32
    %c0_i32_0 = arith.constant 0 : i32
    %2 = arith.cmpi ne, %1, %c0_i32_0 : i32
    scf.if %2 {
      %cst_9 = arith.constant 0.000000e+00 : f32
      %15 = vector.broadcast %cst_9 : f32 to vector<16x128xf32>
      %c0_10 = arith.constant 0 : index
      %c0_11 = arith.constant 0 : index
      %16 = vector.load %arg6[%c0_10, %c0_11] : memref<16x128xf32, #tpu.memory_space<vmem>>, vector<16x128xf32>
      tpu.vector_store %arg6[%c0_10, %c0_11], %15 {strides = array<i32>} : memref<16x128xf32, #tpu.memory_space<vmem>>, vector<16x128xf32>,
    } else {
    }
    %c256_i32 = arith.constant 256 : i32
    %3 = arith.muli %arg1, %c256_i32 : i32
    %4 = tpu.assume_multiple %3, 256 : i32
    %c0 = arith.constant 0 : index
    %c0_1 = arith.constant 0 : index
    %5 = vector.load %arg6[%c0, %c0_1] : memref<16x128xf32, #tpu.memory_space<vmem>>, vector<16x128xf32>
    %c0_2 = arith.constant 0 : index
    %c0_3 = arith.constant 0 : index
    %6 = vector.load %arg2[%c0_2, %c0_3] : memref<16x256xbf16, #tpu.memory_space<vmem>>, vector<16x256xbf16>
    %7 = arith.index_cast %4 : i32 to index
    %c0_4 = arith.constant 0 : index
    %8 = vector.load %arg3[%7, %c0_4] : memref<256x128xbf16, #tpu.memory_space<vmem>>, vector<256x128xbf16>
    %cst = arith.constant dense<0.000000e+00> : vector<16x128xf32>
    %9 = tpu.matmul %6, %8, %cst {dimension_numbers = #tpu.dot_dimension_numbers<[1], [0], [0], [1], [0, 0, 1, 1], [], []>} : vector<16x256xbf16>, vector<256x128xbf16>, vector<16x128xf32> -> vector<16x128xf32>
    %10 = arith.addf %5, %9 : vector<16x128xf32>
    %c0_5 = arith.constant 0 : index
    %c0_6 = arith.constant 0 : index
    %11 = vector.load %arg6[%c0_5, %c0_6] : memref<16x128xf32, #tpu.memory_space<vmem>>, vector<16x128xf32>
    tpu.vector_store %arg6[%c0_5, %c0_6], %10 {strides = array<i32>} : memref<16x128xf32, #tpu.memory_space<vmem>>, vector<16x128xf32>,
    %c0_i32_7 = arith.constant 0 : i32
    %12 = arith.cmpi eq, %arg1, %c0_i32_7 : i32
    %13 = arith.extui %12 : i1 to i32
    %c0_i32_8 = arith.constant 0 : i32
    %14 = arith.cmpi ne, %13, %c0_i32_8 : i32
    scf.if %14 {
      %c0_9 = arith.constant 0 : index
      %c0_10 = arith.constant 0 : index
      %15 = vector.load %arg6[%c0_9, %c0_10] : memref<16x128xf32, #tpu.memory_space<vmem>>, vector<16x128xf32>
      %c0_11 = arith.constant 0 : index
      %c0_12 = arith.constant 0 : index
      %16 = vector.load %arg4[%c0_11, %c0_12] : memref<1x128xf32, #tpu.memory_space<vmem>>, vector<1x128xf32>
      %17 = vector.broadcast %16 : vector<1x128xf32> to vector<16x128xf32>
      %18 = arith.addf %15, %17 : vector<16x128xf32>
      %cst_13 = arith.constant 0.000000e+00 : f32
      %19 = vector.broadcast %cst_13 : f32 to vector<16x128xf32>
      %20 = arith.cmpf oge, %18, %19 : vector<16x128xf32>
      %cst_14 = arith.constant 2.000000e-01 : f32
      %21 = vector.broadcast %cst_14 : f32 to vector<16x128xf32>
      %22 = arith.mulf %21, %18 : vector<16x128xf32>
      %23 = arith.select %20, %18, %22 : vector<16x128xi1>, vector<16x128xf32>
      %24 = arith.truncf %23 : vector<16x128xf32> to vector<16x128xbf16>
      %c0_15 = arith.constant 0 : index
      %c0_16 = arith.constant 0 : index
      %25 = vector.load %arg5[%c0_15, %c0_16] : memref<16x128xbf16, #tpu.memory_space<vmem>>, vector<16x128xbf16>
      tpu.vector_store %arg5[%c0_15, %c0_16], %24 {strides = array<i32>} : memref<16x128xbf16, #tpu.memory_space<vmem>>, vector<16x128xbf16>,
    } else {
    }
    return
  }
  func.func @transform_0(%arg0: i32, %arg1: i32) -> (i32, i32) {
    %c0_i32 = arith.constant 0 : i32
    return %arg0, %arg1 : i32, i32
  }
  func.func @transform_1(%arg0: i32, %arg1: i32) -> (i32, i32) {
    %c0_i32 = arith.constant 0 : i32
    %c0_i32_0 = arith.constant 0 : i32
    %c0_i32_1 = arith.constant 0 : i32
    return %c0_i32, %c0_i32_0 : i32, i32
  }
  func.func @transform_2(%arg0: i32, %arg1: i32) -> (i32, i32) {
    %c0_i32 = arith.constant 0 : i32
    %c0_i32_0 = arith.constant 0 : i32
    %c0_i32_1 = arith.constant 0 : i32
    return %c0_i32, %c0_i32_0 : i32, i32
  }
  func.func @transform_3(%arg0: i32, %arg1: i32) -> (i32, i32) {
    %c0_i32 = arith.constant 0 : i32
    %c0_i32_0 = arith.constant 0 : i32
    return %arg0, %c0_i32 : i32, i32
  }
}

module attributes {stable_mosaic.version = 11 : i64} {
  func.func @_conv_mm_kernel(%arg0: i32, %arg1: i32, %arg2: memref<16x512xbf16, #tpu.memory_space<vmem>>, %arg3: memref<512x128xbf16, #tpu.memory_space<vmem>>, %arg4: memref<1x128xf32, #tpu.memory_space<vmem>>, %arg5: memref<16x128xbf16, #tpu.memory_space<vmem>>, %arg6: memref<16x128xf32, #tpu.memory_space<vmem>>) attributes {dimension_semantics = [#tpu.dimension_semantics<parallel>, #tpu.dimension_semantics<arbitrary>], iteration_bounds = array<i64: 2, 1>, scalar_prefetch = 0 : i64, scratch_operands = 1 : i64, tpu.core_type = #tpu.core_type<tc>, window_params = [{transform_indices = @transform_0, window_bounds = array<i64: 16, 512>}, {pipeline_mode = #tpu.pipeline_mode<synchronous>, transform_indices = @transform_1, window_bounds = array<i64: 512, 128>}, {pipeline_mode = #tpu.pipeline_mode<synchronous>, transform_indices = @transform_2, window_bounds = array<i64: 1, 128>}, {transform_indices = @transform_3, window_bounds = array<i64: 16, 128>}]} {
    %c0_i32 = arith.constant 0 : i32
    %0 = arith.cmpi eq, %arg1, %c0_i32 : i32
    %1 = arith.extui %0 : i1 to i32
    %c0_i32_0 = arith.constant 0 : i32
    %2 = arith.cmpi ne, %1, %c0_i32_0 : i32
    scf.if %2 {
      %cst_9 = arith.constant 0.000000e+00 : f32
      %15 = vector.broadcast %cst_9 : f32 to vector<16x128xf32>
      %c0_10 = arith.constant 0 : index
      %c0_11 = arith.constant 0 : index
      %16 = vector.load %arg6[%c0_10, %c0_11] : memref<16x128xf32, #tpu.memory_space<vmem>>, vector<16x128xf32>
      tpu.vector_store %arg6[%c0_10, %c0_11], %15 {strides = array<i32>} : memref<16x128xf32, #tpu.memory_space<vmem>>, vector<16x128xf32>,
    } else {
    }
    %c512_i32 = arith.constant 512 : i32
    %3 = arith.muli %arg1, %c512_i32 : i32
    %4 = tpu.assume_multiple %3, 512 : i32
    %c0 = arith.constant 0 : index
    %c0_1 = arith.constant 0 : index
    %5 = vector.load %arg6[%c0, %c0_1] : memref<16x128xf32, #tpu.memory_space<vmem>>, vector<16x128xf32>
    %c0_2 = arith.constant 0 : index
    %c0_3 = arith.constant 0 : index
    %6 = vector.load %arg2[%c0_2, %c0_3] : memref<16x512xbf16, #tpu.memory_space<vmem>>, vector<16x512xbf16>
    %7 = arith.index_cast %4 : i32 to index
    %c0_4 = arith.constant 0 : index
    %8 = vector.load %arg3[%7, %c0_4] : memref<512x128xbf16, #tpu.memory_space<vmem>>, vector<512x128xbf16>
    %cst = arith.constant dense<0.000000e+00> : vector<16x128xf32>
    %9 = tpu.matmul %6, %8, %cst {dimension_numbers = #tpu.dot_dimension_numbers<[1], [0], [0], [1], [0, 0, 1, 1], [], []>} : vector<16x512xbf16>, vector<512x128xbf16>, vector<16x128xf32> -> vector<16x128xf32>
    %10 = arith.addf %5, %9 : vector<16x128xf32>
    %c0_5 = arith.constant 0 : index
    %c0_6 = arith.constant 0 : index
    %11 = vector.load %arg6[%c0_5, %c0_6] : memref<16x128xf32, #tpu.memory_space<vmem>>, vector<16x128xf32>
    tpu.vector_store %arg6[%c0_5, %c0_6], %10 {strides = array<i32>} : memref<16x128xf32, #tpu.memory_space<vmem>>, vector<16x128xf32>,
    %c0_i32_7 = arith.constant 0 : i32
    %12 = arith.cmpi eq, %arg1, %c0_i32_7 : i32
    %13 = arith.extui %12 : i1 to i32
    %c0_i32_8 = arith.constant 0 : i32
    %14 = arith.cmpi ne, %13, %c0_i32_8 : i32
    scf.if %14 {
      %c0_9 = arith.constant 0 : index
      %c0_10 = arith.constant 0 : index
      %15 = vector.load %arg6[%c0_9, %c0_10] : memref<16x128xf32, #tpu.memory_space<vmem>>, vector<16x128xf32>
      %c0_11 = arith.constant 0 : index
      %c0_12 = arith.constant 0 : index
      %16 = vector.load %arg4[%c0_11, %c0_12] : memref<1x128xf32, #tpu.memory_space<vmem>>, vector<1x128xf32>
      %17 = vector.broadcast %16 : vector<1x128xf32> to vector<16x128xf32>
      %18 = arith.addf %15, %17 : vector<16x128xf32>
      %cst_13 = arith.constant 0.000000e+00 : f32
      %19 = vector.broadcast %cst_13 : f32 to vector<16x128xf32>
      %20 = arith.cmpf oge, %18, %19 : vector<16x128xf32>
      %cst_14 = arith.constant 2.000000e-01 : f32
      %21 = vector.broadcast %cst_14 : f32 to vector<16x128xf32>
      %22 = arith.mulf %21, %18 : vector<16x128xf32>
      %23 = arith.select %20, %18, %22 : vector<16x128xi1>, vector<16x128xf32>
      %24 = arith.truncf %23 : vector<16x128xf32> to vector<16x128xbf16>
      %c0_15 = arith.constant 0 : index
      %c0_16 = arith.constant 0 : index
      %25 = vector.load %arg5[%c0_15, %c0_16] : memref<16x128xbf16, #tpu.memory_space<vmem>>, vector<16x128xbf16>
      tpu.vector_store %arg5[%c0_15, %c0_16], %24 {strides = array<i32>} : memref<16x128xbf16, #tpu.memory_space<vmem>>, vector<16x128xbf16>,
    } else {
    }
    return
  }
  func.func @transform_0(%arg0: i32, %arg1: i32) -> (i32, i32) {
    %c0_i32 = arith.constant 0 : i32
    return %arg0, %arg1 : i32, i32
  }
  func.func @transform_1(%arg0: i32, %arg1: i32) -> (i32, i32) {
    %c0_i32 = arith.constant 0 : i32
    %c0_i32_0 = arith.constant 0 : i32
    %c0_i32_1 = arith.constant 0 : i32
    return %c0_i32, %c0_i32_0 : i32, i32
  }
  func.func @transform_2(%arg0: i32, %arg1: i32) -> (i32, i32) {
    %c0_i32 = arith.constant 0 : i32
    %c0_i32_0 = arith.constant 0 : i32
    %c0_i32_1 = arith.constant 0 : i32
    return %c0_i32, %c0_i32_0 : i32, i32
  }
  func.func @transform_3(%arg0: i32, %arg1: i32) -> (i32, i32) {
    %c0_i32 = arith.constant 0 : i32
    %c0_i32_0 = arith.constant 0 : i32
    return %arg0, %c0_i32 : i32, i32
  }
}

module attributes {stable_mosaic.version = 11 : i64} {
  func.func @_conv_mm_kernel(%arg0: i32, %arg1: i32, %arg2: memref<32x1024xbf16, #tpu.memory_space<vmem>>, %arg3: memref<1024x128xbf16, #tpu.memory_space<vmem>>, %arg4: memref<1x128xf32, #tpu.memory_space<vmem>>, %arg5: memref<32x128xf32, #tpu.memory_space<vmem>>, %arg6: memref<32x128xf32, #tpu.memory_space<vmem>>) attributes {dimension_semantics = [#tpu.dimension_semantics<parallel>, #tpu.dimension_semantics<arbitrary>], iteration_bounds = array<i64: 2, 1>, scalar_prefetch = 0 : i64, scratch_operands = 1 : i64, tpu.core_type = #tpu.core_type<tc>, window_params = [{transform_indices = @transform_0, window_bounds = array<i64: 32, 1024>}, {pipeline_mode = #tpu.pipeline_mode<synchronous>, transform_indices = @transform_1, window_bounds = array<i64: 1024, 128>}, {pipeline_mode = #tpu.pipeline_mode<synchronous>, transform_indices = @transform_2, window_bounds = array<i64: 1, 128>}, {transform_indices = @transform_3, window_bounds = array<i64: 32, 128>}]} {
    %c0_i32 = arith.constant 0 : i32
    %0 = arith.cmpi eq, %arg1, %c0_i32 : i32
    %1 = arith.extui %0 : i1 to i32
    %c0_i32_0 = arith.constant 0 : i32
    %2 = arith.cmpi ne, %1, %c0_i32_0 : i32
    scf.if %2 {
      %cst_9 = arith.constant 0.000000e+00 : f32
      %15 = vector.broadcast %cst_9 : f32 to vector<32x128xf32>
      %c0_10 = arith.constant 0 : index
      %c0_11 = arith.constant 0 : index
      %16 = vector.load %arg6[%c0_10, %c0_11] : memref<32x128xf32, #tpu.memory_space<vmem>>, vector<32x128xf32>
      tpu.vector_store %arg6[%c0_10, %c0_11], %15 {strides = array<i32>} : memref<32x128xf32, #tpu.memory_space<vmem>>, vector<32x128xf32>,
    } else {
    }
    %c1024_i32 = arith.constant 1024 : i32
    %3 = arith.muli %arg1, %c1024_i32 : i32
    %4 = tpu.assume_multiple %3, 512 : i32
    %c0 = arith.constant 0 : index
    %c0_1 = arith.constant 0 : index
    %5 = vector.load %arg6[%c0, %c0_1] : memref<32x128xf32, #tpu.memory_space<vmem>>, vector<32x128xf32>
    %c0_2 = arith.constant 0 : index
    %c0_3 = arith.constant 0 : index
    %6 = vector.load %arg2[%c0_2, %c0_3] : memref<32x1024xbf16, #tpu.memory_space<vmem>>, vector<32x1024xbf16>
    %7 = arith.index_cast %4 : i32 to index
    %c0_4 = arith.constant 0 : index
    %8 = vector.load %arg3[%7, %c0_4] : memref<1024x128xbf16, #tpu.memory_space<vmem>>, vector<1024x128xbf16>
    %cst = arith.constant dense<0.000000e+00> : vector<32x128xf32>
    %9 = tpu.matmul %6, %8, %cst {dimension_numbers = #tpu.dot_dimension_numbers<[1], [0], [0], [1], [0, 0, 1, 1], [], []>} : vector<32x1024xbf16>, vector<1024x128xbf16>, vector<32x128xf32> -> vector<32x128xf32>
    %10 = arith.addf %5, %9 : vector<32x128xf32>
    %c0_5 = arith.constant 0 : index
    %c0_6 = arith.constant 0 : index
    %11 = vector.load %arg6[%c0_5, %c0_6] : memref<32x128xf32, #tpu.memory_space<vmem>>, vector<32x128xf32>
    tpu.vector_store %arg6[%c0_5, %c0_6], %10 {strides = array<i32>} : memref<32x128xf32, #tpu.memory_space<vmem>>, vector<32x128xf32>,
    %c0_i32_7 = arith.constant 0 : i32
    %12 = arith.cmpi eq, %arg1, %c0_i32_7 : i32
    %13 = arith.extui %12 : i1 to i32
    %c0_i32_8 = arith.constant 0 : i32
    %14 = arith.cmpi ne, %13, %c0_i32_8 : i32
    scf.if %14 {
      %c0_9 = arith.constant 0 : index
      %c0_10 = arith.constant 0 : index
      %15 = vector.load %arg6[%c0_9, %c0_10] : memref<32x128xf32, #tpu.memory_space<vmem>>, vector<32x128xf32>
      %c0_11 = arith.constant 0 : index
      %c0_12 = arith.constant 0 : index
      %16 = vector.load %arg4[%c0_11, %c0_12] : memref<1x128xf32, #tpu.memory_space<vmem>>, vector<1x128xf32>
      %17 = vector.broadcast %16 : vector<1x128xf32> to vector<32x128xf32>
      %18 = arith.addf %15, %17 : vector<32x128xf32>
      %c0_13 = arith.constant 0 : index
      %c0_14 = arith.constant 0 : index
      %19 = vector.load %arg5[%c0_13, %c0_14] : memref<32x128xf32, #tpu.memory_space<vmem>>, vector<32x128xf32>
      tpu.vector_store %arg5[%c0_13, %c0_14], %18 {strides = array<i32>} : memref<32x128xf32, #tpu.memory_space<vmem>>, vector<32x128xf32>,
    } else {
    }
    return
  }
  func.func @transform_0(%arg0: i32, %arg1: i32) -> (i32, i32) {
    %c0_i32 = arith.constant 0 : i32
    return %arg0, %arg1 : i32, i32
  }
  func.func @transform_1(%arg0: i32, %arg1: i32) -> (i32, i32) {
    %c0_i32 = arith.constant 0 : i32
    %c0_i32_0 = arith.constant 0 : i32
    %c0_i32_1 = arith.constant 0 : i32
    return %c0_i32, %c0_i32_0 : i32, i32
  }
  func.func @transform_2(%arg0: i32, %arg1: i32) -> (i32, i32) {
    %c0_i32 = arith.constant 0 : i32
    %c0_i32_0 = arith.constant 0 : i32
    %c0_i32_1 = arith.constant 0 : i32
    return %c0_i32, %c0_i32_0 : i32, i32
  }
  func.func @transform_3(%arg0: i32, %arg1: i32) -> (i32, i32) {
    %c0_i32 = arith.constant 0 : i32
    %c0_i32_0 = arith.constant 0 : i32
    return %arg0, %c0_i32 : i32, i32
  }
}

</mosaic_0001>

<bundles_post_ra>
// kernel: _lambda_.5
= control target key start
LH: loop header
LB: loop body
LE: loop exit
PB: predicated region body
PF: predicated region fallthrough
CT: control target
= control target key end

     0   :  { %s1130_s12 = smov 0   ;;  %s1132_s13 = smov 0   ;;  %s1301_s0 = inlined_call_operand.vmem [shape: bf16[162,64], index: 0, kind: input, shape index: {}]   ;;  %s1302_s1 = inlined_call_operand.vmem [shape: bf16[64,128], index: 1, kind: input, shape index: {}]   ;;  %s1303_s2 = inlined_call_operand.vmem [shape: f32[1,128], index: 2, kind: input, shape index: {}]   ;;  %s1304_s3 = inlined_call_operand.vmem [shape: bf16[162,128], index: 3, kind: output, shape index: {}]  }
   0x1   :  { %s1134_s14 = smov 0   ;;  %s1136_s15 = smov 0  }
   0x2   :  { %s1138_s16 = smov 0  }
   0x3 LB: > { %s771_s17 = sadd.s32 4294967295, %s1076_s16   ;;  %s25_s18 = sadd.s32 1, %s1072_s15  ;;  %s1076_s16 = sphi %s1138_s16, %s13_s16   ;;  %s1072_s15 = sphi %s1136_s15, %s1313_s15   ;;  %s1068_s14 = sphi %s1134_s14, %s1312_s14   ;;  %s1064_s13 = sphi %s1132_s13, %s1311_s13   ;;  %s1060_s12 = sphi %s1130_s12, %s1310_s12  }
   0x4   : > { %p27_p0 = scmp.ge.s32.totalorder %s25_s18, 2  ;;  %s102_s19 = sadd.s32 1, %s1064_s13 }
   0x5   : > { %p112_p1 = scmp.ne.s32.totalorder %s1064_s13, %s1060_s12  ;;  %p113_p2 = scmp.eq.s32.totalorder %s771_s17, 1 }
   0x6   : > { %s1315_s18 = smov (%p27_p0, %s25_s18), 0  ;;  %p775_p4 = scmp.ge.s32.totalorder %s1076_s16, 1 }
   0x7   : > { %p1162_p3 = por %p113_p2, %p112_p1  ;;  %s99_s21 = ssub.s32 %s1072_s15, %s1315_s18 }
   0x8   : > { %p163_p5 = scmp.lt.s32.totalorder %s1076_s16, 3  ;;  %p100_p6 = scmp.eq.s32.totalorder %s99_s21, 0 }
   0xa   : > { %p164_p7 = pnand %p775_p4, %p163_p5 }
   0xb   : > { %s1171_s22 = scalar_select %p100_p6, %s1064_s13, %s102_s19  }
   0xc   : > { %167 = sbr.rel (%p164_p7) target bundleno = 256 (0x100), region = 32  ;;  %s190_s17 = sand.u32 (!%p164_p7), 1, %s1060_s12  }
   0xd   : > { %s1177_s25 = smul.u32 (!%p164_p7), 12, %s1068_s14 }
   0xe   : > { %s893_s19 = smul.u32 (!%p164_p7), 48, %s190_s17 }
   0xf   : > { %p198_p8 = scmp.lt.s32.totalorder (!%p164_p7), %s1177_s25, 20 }
  0x10   : > { %s1206_s12 = scalar_lea.vmem (!%p164_p7), [#allocation3], %s893_s19  }
  0x11   : > { %v844_v0 = vld [vmem:[%s1302_s1 + $0x18] sm:$0xff]  ;;  %v843_v1 = vld [vmem:[%s1302_s1 + $0x10] sm:$0xff]  ;;  %s199_s28 = scalar_select %p198_p8, %s1177_s25, 20  ;;  %v842_v2 = vld [vmem:[%s1302_s1 + $0x8] sm:$0xff]  ;;  %vm323_vm0 = vcmask 523264  }
  0x12   : > { %881 = vmatpush.bf16.msra.mxu1 %v844_v0  ;;  %883 = vmatpush.bf16.msra.mxu3 %v844_v0  ;;  %v841_v3 = vld [vmem:[%s1302_s1] sm:$0xff]  ;;  %s504_s21 = ssub.s32 (%p1162_p3), 21, %s1177_s25  ;;  %s845_s23 = smul.u32 (%p1162_p3), 48, %s1068_s14 }
  0x13   : > { %882 = vmatpush.bf16.msra.mxu2 %v844_v0  ;;  %346 = vmatpush.bf16.msra.mxu0 %v844_v0  ;;  %s776_s4 = sshll.u32 %s199_s28, 2  ;;  %v1196_v11 = vld [vmem:[%s1303_s2] ss:$0 sm:$0xff]  ;;  %p505_p9 = scmp.lt.s32.totalorder (%p1162_p3), %s504_s21, 12 }
  0x14   : > { %s204_s9 = scalar_lea.vmem %s1301_s0, %s776_s4  ;;  %s1226_s27 = scalar_lea.vmem (%p1162_p3), %s1304_s3, %s845_s23  }
  0x15   : > { %v836_v4 = vld [vmem:[%s204_s9 + $0x8] sm:$0xff]  ;;  %v839_v5 = vld [vmem:[%s204_s9 + $0x20] sm:$0xff]  ;;  %v838_v6 = vld [vmem:[%s204_s9 + $0x18] sm:$0xff] }
  0x16   : > { %884 = vmatpush.bf16.msra.mxu1 %v843_v1  ;;  %886 = vmatpush.bf16.msra.mxu3 %v843_v1  ;;  %v835_v7 = vld [vmem:[%s204_s9] sm:$0xff]  ;;  %v837_v8 = vld [vmem:[%s204_s9 + $0x10] sm:$0xff]  ;;  %v840_v9 = vld [vmem:[%s204_s9 + $0x28] sm:$0xff] }
  0x17   : > { %885 = vmatpush.bf16.msra.mxu2 %v843_v1  ;;  %347 = vmatpush.bf16.msra.mxu0 %v843_v1 }
  0x1a   : > { %887 = vmatpush.bf16.msra.mxu1 %v842_v2  ;;  %889 = vmatpush.bf16.msra.mxu3 %v842_v2 }
  0x1b   : > { %888 = vmatpush.bf16.msra.mxu2 %v842_v2  ;;  %348 = vmatpush.bf16.msra.mxu0 %v842_v2 }
  0x1e   : > { %890 = vmatpush.bf16.msra.mxu1 %v841_v3  ;;  %892 = vmatpush.bf16.msra.mxu3 %v841_v3 }
  0x1f   : > { %891 = vmatpush.bf16.msra.mxu2 %v841_v3  ;;  %349 = vmatpush.bf16.msra.mxu0 %v841_v3 }
  0x21   : > { %818 = vmatmul.msk.bf16.vlgmr.msra.gmra.mxu1 %vm323_vm0, %v836_v4  ;;  %821 = vmatmul.msk.bf16.vlgmr.msra.gmra.mxu3 %vm323_vm0, %v839_v5 }
  0x22   : > { %820 = vmatmul.msk.bf16.vlgmr.msra.gmra.mxu2 %vm323_vm0, %v838_v6  ;;  %817 = vmatmul.msk.bf16.vlgmr.msra.gmra.mxu0 %vm323_vm0, %v835_v7 }
  0x31   : > { %819 = vmatmul.msk.bf16.gmra.mxu1 %vm323_vm0, %v837_v8  ;;  %822 = vmatmul.msk.bf16.gmra.mxu3 %vm323_vm0, %v840_v9 }
  0x9e   : > { %v356_v10 = vpop.f32.mrf.mxu1 }
  0x9f   : > { %v351_v12 = vpop.f32.mrf.mxu0  ;;  %v426_v14 = vadd.f32 %v1196_v11, %v356_v10 }
  0xa0   : > { %v424_v13 = vadd.f32 %v1196_v11, %v351_v12 }
  0xa1   : > { %v450_v19 = vmul.f32 0.2, %v426_v14  ;;  %vm438_vm2 = vcmp.ge.f32.partialorder %v426_v14, 0.0 }
  0xa2   : > { %v448_v18 = vmul.f32 0.2, %v424_v13  ;;  %vm436_vm1 = vcmp.ge.f32.partialorder %v424_v13, 0.0 }
  0xa3   : > { %v462_v28 = vsel %vm438_vm2, %v426_v14, %v450_v19 }
  0xa4   : > { %v371_v15 = vpop.f32.mrf.mxu3  ;;  %v460_v26 = vsel %vm436_vm1, %v424_v13, %v448_v18 }
  0xa5   : > { %v366_v16 = vpop.f32.mrf.mxu2  ;;  %v432_v24 = vadd.f32 %v1196_v11, %v371_v15 }
  0xa6   : > { %v358_v17 = vpop.f32.mrf.mxu1  ;;  %v430_v22 = vadd.f32 %v1196_v11, %v366_v16 }
  0xa7   : > { %v427_v20 = vadd.f32 %v1196_v11, %v358_v17  ;;  %v353_v21 = vpop.f32.mrf.mxu0  ;;  %v456_v34 = vmul.f32 0.2, %v432_v24  ;;  %vm444_vm6 = vcmp.ge.f32.partialorder %v432_v24, 0.0 }
  0xa8   : > { %v425_v23 = vadd.f32 %v1196_v11, %v353_v21  ;;  %v454_v31 = vmul.f32 0.2, %v430_v22  ;;  %vm442_vm5 = vcmp.ge.f32.partialorder %v430_v22, 0.0 }
  0xa9   : > { %vm439_vm3 = vcmp.ge.f32.partialorder %v427_v20, 0.0  ;;  %v451_v25 = vmul.f32 0.2, %v427_v20  ;;  %v468_v43 = vsel %vm444_vm6, %v432_v24, %v456_v34 }
  0xaa   : > { %vm437_vm4 = vcmp.ge.f32.partialorder %v425_v23, 0.0  ;;  %v449_v27 = vmul.f32 0.2, %v425_v23  ;;  %v466_v41 = vsel %vm442_vm5, %v430_v22, %v454_v31 }
  0xab   : > { %v463_v29 = vsel %vm439_vm3, %v427_v20, %v451_v25 }
  0xac   : > { %v854_v30 = vpack.c.bf16 %v463_v29, %v462_v28  ;;  %v373_v32 = vpop.f32.mrf.mxu3  ;;  %v461_v33 = vsel %vm437_vm4, %v425_v23, %v449_v27 }
  0xad   : > { %v433_v35 = vadd.f32 %v1196_v11, %v373_v32  ;;  %v849_v36 = vpack.c.bf16 %v461_v33, %v460_v26  ;;  %v368_v37 = vpop.f32.mrf.mxu2 }
  0xae   : > { %876 = vst [vmem:[%s1206_s12 + $0x8] sm:$0xff] %v854_v30   ;;  %v361_v38 = vpop.f32.mrf.mxu1  ;;  %v431_v39 = vadd.f32 %v1196_v11, %v368_v37 }
  0xaf   : > { %vm445_vm7 = vcmp.ge.f32.partialorder %v433_v35, 0.0  ;;  %v457_v40 = vmul.f32 0.2, %v433_v35  ;;  %850 = vst [vmem:[%s1206_s12] sm:$0xff] %v849_v36   ;;  %v428_v47 = vadd.f32 %v1196_v11, %v361_v38 }
  0xb0   : > { %vm443_vm8 = vcmp.ge.f32.partialorder %v431_v39, 0.0  ;;  %v455_v42 = vmul.f32 0.2, %v431_v39 }
  0xb1   : > { %v469_v44 = vsel %vm445_vm7, %v433_v35, %v457_v40  ;;  %v452_v51 = vmul.f32 0.2, %v428_v47  ;;  %vm440_vm9 = vcmp.ge.f32.partialorder %v428_v47, 0.0 }
  0xb2   : > { %v869_v45 = vpack.c.bf16 %v469_v44, %v468_v43  ;;  %v467_v46 = vsel %vm443_vm8, %v431_v39, %v455_v42 }
  0xb3   : > { %v864_v48 = vpack.c.bf16 %v467_v46, %v466_v41  ;;  %v464_v55 = vsel %vm440_vm9, %v428_v47, %v452_v51 }
  0xb4   : > { %879 = vst [vmem:[%s1206_s12 + $0x20] sm:$0xff] %v869_v45   ;;  %v376_v49 = vpop.f32.mrf.mxu3 }
  0xb5   : > { %878 = vst [vmem:[%s1206_s12 + $0x18] sm:$0xff] %v864_v48   ;;  %v434_v53 = vadd.f32 %v1196_v11, %v376_v49 }
  0xb6   : > { %v363_v50 = vpop.f32.mrf.mxu1 }
  0xb7   : > { %v429_v52 = vadd.f32 %v1196_v11, %v363_v50  ;;  %v458_v59 = vmul.f32 0.2, %v434_v53  ;;  %vm446_vm11 = vcmp.ge.f32.partialorder %v434_v53, 0.0 }
  0xb9   : > { %vm441_vm10 = vcmp.ge.f32.partialorder %v429_v52, 0.0  ;;  %v453_v54 = vmul.f32 0.2, %v429_v52  ;;  %v470_v62 = vsel %vm446_vm11, %v434_v53, %v458_v59 }
  0xbb   : > { %v465_v56 = vsel %vm441_vm10, %v429_v52, %v453_v54 }
  0xbc   : > { %v859_v57 = vpack.c.bf16 %v465_v56, %v464_v55  ;;  %v378_v58 = vpop.f32.mrf.mxu3 }
  0xbd   : > { %v435_v60 = vadd.f32 %v1196_v11, %v378_v58 }
  0xbe   : > { %877 = vst [vmem:[%s1206_s12 + $0x10] sm:$0xff] %v859_v57  }
  0xbf   : > { %vm447_vm12 = vcmp.ge.f32.partialorder %v435_v60, 0.0  ;;  %v459_v61 = vmul.f32 0.2, %v435_v60 }
  0xc0   : > { %502 = sbr.rel (!%p1162_p3) target bundleno = 256 (0x100), region = 44 }
  0xc1   : > { %v471_v63 = vsel %vm447_vm12, %v435_v60, %v459_v61 }
  0xc2   : > { %v874_v0 = vpack.c.bf16 %v471_v63, %v470_v62 }
  0xc4   : > { %880 = vst [vmem:[%s1206_s12 + $0x28] sm:$0xff] %v874_v0  }
  0xc5   : > { %s1317_s21 = smov (!%p505_p9, %s504_s21), 12 }
  0xc6   : > { %s823_s28 = sshll.u32 %s1317_s21, 2 }
  0xc7   : > { %p826_p10 = scmp.eq.s32.totalorder %s823_s28, 0 }
  0xc8   : > { %1000 = sdivrem.u32 (!%p826_p10), %s1317_s21, 12 }
  0xc9   : > { %513 = sbr.rel (%p826_p10) target bundleno = 256 (0x100), region = 48 }
  0xd1   : > { %s1232_s20 = spop.drf %1000 }
  0xd2   : > { %s1002_s29 = spop.drf %1000  ;;  %p827_p11 = scmp.le.s32.totalorder %s1232_s20, 0 }
  0xd3   : > { %s1306_s14 = smov (!%p827_p11), %s1226_s27  ;;  %s1307_s25 = smov (!%p827_p11), %s1206_s12 }
  0xd4   : > { %719 = sbr.rel (%p827_p11) target bundleno = 230 (0xe6), region = 121  ;;  %s1241_s30 = smov (!%p827_p11), 0  }
  0xd5   : > { %s1243_s4 = smov (!%p827_p11), 0  }
  0xd9 LB: >> { %v531_v1 = vld [vmem:[%s1084_s25] sm:$0xf]  ;;  %v533_v2 = vld [vmem:[%s1084_s25 + $0x4] sm:$0xf]  ;;  %v535_v3 = vld [vmem:[%s1084_s25 + $0x8] sm:$0xf]  ;;  %s1092_s4 = sphi %s1243_s4, %s525_s4   ;;  %s1088_s30 = sphi %s1241_s30, %s1309_s30   ;;  %s1084_s25 = sphi %s1307_s25, %s560_s25   ;;  %s1080_s14 = sphi %s1306_s14, %s1308_s14  }
  0xda   : >> { %532 = vst [vmem:[%s1080_s14] sm:$0xf] %v531_v1  ;;  %v537_v4 = vld [vmem:[%s1084_s25 + $0xc] sm:$0xf]  ;;  %s555_s5 = sadd.s32 1, %s1088_s30  ;;  %v539_v5 = vld [vmem:[%s1084_s25 + $0x10] sm:$0xf] }
  0xdb   : >> { %534 = vst [vmem:[%s1080_s14 + $0x4] sm:$0xf] %v533_v2  ;;  %p556_p12 = scmp.ge.s32.totalorder %s555_s5, %s1232_s20  ;;  %v541_v6 = vld [vmem:[%s1084_s25 + $0x14] sm:$0xf]  ;;  %v543_v7 = vld [vmem:[%s1084_s25 + $0x18] sm:$0xf] }
  0xdc   : >> { %536 = vst [vmem:[%s1080_s14 + $0x8] sm:$0xf] %v535_v3  ;;  %v545_v8 = vld [vmem:[%s1084_s25 + $0x1c] sm:$0xf]  ;;  %v547_v9 = vld [vmem:[%s1084_s25 + $0x20] sm:$0xf] }
  0xdd   : >> { %538 = vst [vmem:[%s1080_s14 + $0xc] sm:$0xf] %v537_v4  ;;  %s1319_s5 = smov (%p556_p12, %s555_s5), 0  ;;  %v549_v10 = vld [vmem:[%s1084_s25 + $0x24] sm:$0xf]  ;;  %s525_s4 = sadd.s32 1, %s1092_s4  }
  0xde   : >> { %540 = vst [vmem:[%s1080_s14 + $0x10] sm:$0xf] %v539_v5  ;;  %s558_s6 = smul.u32 48, %s1319_s5  ;;  %v551_v11 = vld [vmem:[%s1084_s25 + $0x28] sm:$0xf]  ;;  %p524_p13 = scmp.ge.s32.totalorder %s525_s4, %s1232_s20 }
  0xdf   : >> { %542 = vst [vmem:[%s1080_s14 + $0x14] sm:$0xf] %v541_v6  ;;  %v553_v12 = vld [vmem:[%s1084_s25 + $0x2c] sm:$0xf]  ;;  %s1309_s30 = smov %s1319_s5 }
  0xe0   : >> { %544 = vst [vmem:[%s1080_s14 + $0x18] sm:$0xf] %v543_v7  ;;  %s560_s25 = scalar_lea.vmem %s1206_s12, %s558_s6 [#allocation3]   ;;  %s561_s7 = scalar_lea.vmem %s1226_s27, %s558_s6  }
  0xe1   : >> { %546 = vst [vmem:[%s1080_s14 + $0x1c] sm:$0xf] %v545_v8  ;;  %527 = sbr.rel (!%p524_p13) target bundleno = 217 (0xd9), region = 127 }
  0xe2   : >> { %548 = vst [vmem:[%s1080_s14 + $0x20] sm:$0xf] %v547_v9 }
  0xe3   : >> { %550 = vst [vmem:[%s1080_s14 + $0x24] sm:$0xf] %v549_v10 }
  0xe4   : >> { %552 = vst [vmem:[%s1080_s14 + $0x28] sm:$0xf] %v551_v11 }
  0xe5   : >> { %554 = vst [vmem:[%s1080_s14 + $0x2c] sm:$0xf] %v553_v12  ;;  %s1308_s14 = smov %s561_s7 }
  0xe6 PF: > { %1003 = sdivrem.u32 %s1317_s21, 12 }
  0xe7   : > { %s828_s8 = smul.u32 48, %s1232_s20 }
  0xe9   : > { %s1281_s9 = scalar_lea.vmem %s1206_s12, %s828_s8 [#allocation3]   ;;  %s568_s10 = scalar_lea.vmem %s1226_s27, %s828_s8  }
  0xef   : > { %s1004_s11 = spop.drf %1003 }
  0xf0   : > { %s1005_s17 = spop.drf %1003 }
  0xf1   : > { %p830_p0 = scmp.le.s32.totalorder %s1005_s17, 0 }
  0xf2   : > { %s1094_s19 = smov (!%p830_p0), %s568_s10   ;;  %s1098_s23 = smov (!%p830_p0), %s1281_s9  }
  0xf3   : > { %733 = sbr.rel (%p830_p0) target bundleno = 256 (0x100), region = 132  ;;  %s1102_s24 = smov (!%p830_p0), 0  }
  0xf4   : > { %s1106_s26 = smov (!%p830_p0), 0  }
  0xf8 LB: >> { %v578_v13 = vld [vmem:[%s1100_s23] sm:$0xf]  ;;  %s580_s12 = sadd.s32 1, %s1104_s24  ;;  %s572_s26 = sadd.s32 1, %s1108_s26   ;;  %s1108_s26 = sphi %s1106_s26, %s572_s26   ;;  %s1104_s24 = sphi %s1102_s24, %s1103_s24   ;;  %s1100_s23 = sphi %s1098_s23, %s585_s23   ;;  %s1096_s19 = sphi %s1094_s19, %s586_s19  }
  0xf9   : >> { %579 = vst [vmem:[%s1096_s19] sm:$0xf] %v578_v13  ;;  %p581_p1 = scmp.ge.s32.totalorder %s580_s12, %s1005_s17  ;;  %p571_p2 = scmp.ge.s32.totalorder %s572_s26, %s1005_s17 }
  0xfb   : >> { %s1321_s12 = smov (%p581_p1, %s580_s12), 0  ;;  %574 = sbr.rel (!%p571_p2) target bundleno = 248 (0xf8), region = 138 }
  0xfc   : >> { %s831_s21 = sshll.u32 %s1321_s12, 2  ;;  %s1103_s24 = smov %s1321_s12  }
  0xfd   : >> { %s585_s23 = scalar_lea.vmem %s1281_s9, %s831_s21 [#allocation3]   ;;  %s586_s19 = scalar_lea.vmem %s568_s10, %s831_s21  }
 0x100 PF: > { %s13_s16 = sadd.s32 1, %s1076_s16   ;;  %s1310_s12 = smov %s1064_s13 }
 0x101   : > { %p10_p3 = scmp.ge.s32.totalorder %s13_s16, 4   ;;  %s1311_s13 = smov %s1171_s22 }
 0x102   : > { %s1312_s14 = smov %s1072_s15  ;;  %s1313_s15 = smov %s1315_s18 }
 0x103   :  { %12 = sbr.rel (!%p10_p3) target bundleno = 3 (0x3), region = 149 }

// kernel: _lambda_.6
= control target key start
LH: loop header
LB: loop body
LE: loop exit
PB: predicated region body
PF: predicated region fallthrough
CT: control target
= control target key end

     0   :  { %s941_s12 = smov 0   ;;  %s943_s13 = smov 0   ;;  %s1085_s0 = inlined_call_operand.vmem [shape: bf16[50,128], index: 0, kind: input, shape index: {}]   ;;  %s1086_s1 = inlined_call_operand.vmem [shape: bf16[128,128], index: 1, kind: input, shape index: {}]   ;;  %s1087_s2 = inlined_call_operand.vmem [shape: f32[1,128], index: 2, kind: input, shape index: {}]   ;;  %s1088_s3 = inlined_call_operand.vmem [shape: bf16[50,128], index: 3, kind: output, shape index: {}]  }
   0x1   :  { %s945_s14 = smov 0   ;;  %s947_s15 = smov 0  }
   0x2   :  { %s949_s16 = smov 0  }
   0x3 LB: > { %s615_s17 = sadd.s32 4294967295, %s887_s16   ;;  %s25_s18 = sadd.s32 1, %s883_s15  ;;  %s887_s16 = sphi %s949_s16, %s13_s16   ;;  %s883_s15 = sphi %s947_s15, %s1096_s15   ;;  %s879_s14 = sphi %s945_s14, %s1095_s14   ;;  %s875_s13 = sphi %s943_s13, %s1094_s13   ;;  %s871_s12 = sphi %s941_s12, %s1093_s12  }
   0x4   : > { %p27_p0 = scmp.ge.s32.totalorder %s25_s18, 2  ;;  %s102_s19 = sadd.s32 1, %s875_s13 }
   0x5   : > { %p112_p1 = scmp.ne.s32.totalorder %s875_s13, %s871_s12  ;;  %p113_p2 = scmp.eq.s32.totalorder %s615_s17, 1 }
   0x6   : > { %s1098_s18 = smov (%p27_p0, %s25_s18), 0  ;;  %p619_p4 = scmp.ge.s32.totalorder %s887_s16, 1 }
   0x7   : > { %p973_p3 = por %p113_p2, %p112_p1  ;;  %s99_s21 = ssub.s32 %s883_s15, %s1098_s18 }
   0x8   : > { %p163_p5 = scmp.lt.s32.totalorder %s887_s16, 3  ;;  %p100_p6 = scmp.eq.s32.totalorder %s99_s21, 0 }
   0xa   : > { %p164_p7 = pnand %p619_p4, %p163_p5 }
   0xb   : > { %s982_s22 = scalar_select %p100_p6, %s875_s13, %s102_s19  }
   0xc   : > { %167 = sbr.rel (%p164_p7) target bundleno = 232 (0xe8), region = 32  ;;  %s997_s4 = sshll.u32 (!%p164_p7), %s879_s14, 2 }
   0xd   : > { %p198_p8 = scmp.lt.s32.totalorder (!%p164_p7), %s997_s4, 6  ;;  %s190_s28 = sand.u32 (!%p164_p7), 1, %s871_s12  }
   0xe   : > { %s620_s29 = sshll.u32 (!%p164_p7), %s190_s28, 4 }
   0xf   : > { %s1020_s12 = scalar_lea.vmem (!%p164_p7), [#allocation3], %s620_s29  }
  0x11   : > { %v689_v0 = vld [vmem:[%s1086_s1 + $0x38] sm:$0xff]  ;;  %v688_v1 = vld [vmem:[%s1086_s1 + $0x30] sm:$0xff]  ;;  %v687_v2 = vld [vmem:[%s1086_s1 + $0x28] sm:$0xff]  ;;  %s199_s9 = scalar_select %p198_p8, %s997_s4, 6 }
  0x12   : > { %312 = vmatpush.bf16.msra.mxu0 %v689_v0  ;;  %704 = vmatpush.bf16.msra.mxu1 %v689_v0  ;;  %v686_v3 = vld [vmem:[%s1086_s1 + $0x20] sm:$0xff]  ;;  %v685_v4 = vld [vmem:[%s1086_s1 + $0x18] sm:$0xff]  ;;  %v684_v5 = vld [vmem:[%s1086_s1 + $0x10] sm:$0xff]  ;;  %s382_s30 = ssub.s32 (%p973_p3), 7, %s997_s4  ;;  %s690_s5 = sshll.u32 (%p973_p3), %s879_s14, 4 }
  0x13   : > { %v683_v6 = vld [vmem:[%s1086_s1 + $0x8] sm:$0xff]  ;;  %s622_s17 = sshll.u32 %s199_s9, 2  ;;  %v682_v7 = vld [vmem:[%s1086_s1] sm:$0xff]  ;;  %p383_p9 = scmp.lt.s32.totalorder (%p973_p3), %s382_s30, 4 }
  0x14   : > { %s204_s25 = scalar_lea.vmem %s1085_s0, %s622_s17  ;;  %v816_v12 = vld [vmem:[%s1087_s2] ss:$0 sm:$0xff]  ;;  %s1031_s8 = scalar_lea.vmem (%p973_p3), %s1088_s3, %s690_s5  }
  0x15   : > { %v680_v8 = vld [vmem:[%s204_s25] sm:$0xff]  ;;  %v681_v9 = vld [vmem:[%s204_s25 + $0x8] sm:$0xff] }
  0x16   : > { %313 = vmatpush.bf16.msra.mxu0 %v688_v1  ;;  %705 = vmatpush.bf16.msra.mxu1 %v688_v1 }
  0x1a   : > { %314 = vmatpush.bf16.msra.mxu0 %v687_v2  ;;  %706 = vmatpush.bf16.msra.mxu1 %v687_v2 }
  0x1e   : > { %315 = vmatpush.bf16.msra.mxu0 %v686_v3  ;;  %707 = vmatpush.bf16.msra.mxu1 %v686_v3 }
  0x22   : > { %316 = vmatpush.bf16.msra.mxu0 %v685_v4  ;;  %708 = vmatpush.bf16.msra.mxu1 %v685_v4 }
  0x26   : > { %317 = vmatpush.bf16.msra.mxu0 %v684_v5  ;;  %709 = vmatpush.bf16.msra.mxu1 %v684_v5 }
  0x2a   : > { %318 = vmatpush.bf16.msra.mxu0 %v683_v6  ;;  %710 = vmatpush.bf16.msra.mxu1 %v683_v6 }
  0x2e   : > { %319 = vmatpush.bf16.msra.mxu0 %v682_v7  ;;  %711 = vmatpush.bf16.msra.mxu1 %v682_v7 }
  0x31   : > { %320 = vmatmul.bf16.vlgmr.msra.gmra.mxu0 %v680_v8  ;;  %325 = vmatmul.bf16.vlgmr.msra.gmra.mxu1 %v681_v9 }
  0xae   : > { %v321_v10 = vpop.f32.mrf.mxu0  ;;  %v326_v11 = vpop.f32.mrf.mxu1 }
  0xaf   : > { %v350_v13 = vadd.f32 %v816_v12, %v321_v10  ;;  %v352_v14 = vadd.f32 %v816_v12, %v326_v11 }
  0xb1   : > { %v358_v17 = vmul.f32 0.2, %v350_v13  ;;  %v360_v18 = vmul.f32 0.2, %v352_v14  ;;  %vm354_vm0 = vcmp.ge.f32.partialorder %v350_v13, 0.0  ;;  %vm356_vm1 = vcmp.ge.f32.partialorder %v352_v14, 0.0 }
  0xb3   : > { %v362_v23 = vsel %vm354_vm0, %v350_v13, %v358_v17  ;;  %v364_v24 = vsel %vm356_vm1, %v352_v14, %v360_v18 }
  0xb6   : > { %v323_v15 = vpop.f32.mrf.mxu0  ;;  %v328_v16 = vpop.f32.mrf.mxu1 }
  0xb7   : > { %v351_v19 = vadd.f32 %v816_v12, %v323_v15  ;;  %v353_v20 = vadd.f32 %v816_v12, %v328_v16 }
  0xb9   : > { %vm355_vm2 = vcmp.ge.f32.partialorder %v351_v19, 0.0  ;;  %v359_v21 = vmul.f32 0.2, %v351_v19  ;;  %vm357_vm3 = vcmp.ge.f32.partialorder %v353_v20, 0.0  ;;  %v361_v22 = vmul.f32 0.2, %v353_v20 }
  0xbb   : > { %v363_v25 = vsel %vm355_vm2, %v351_v19, %v359_v21  ;;  %v365_v26 = vsel %vm357_vm3, %v353_v20, %v361_v22  ;;  %380 = sbr.rel (!%p973_p3) target bundleno = 232 (0xe8), region = 44 }
  0xbc   : > { %v696_v27 = vpack.c.bf16 %v363_v25, %v362_v23  ;;  %v701_v28 = vpack.c.bf16 %v365_v26, %v364_v24 }
  0xbe   : > { %697 = vst [vmem:[%s1020_s12] sm:$0xff] %v696_v27  }
  0xbf   : > { %703 = vst [vmem:[%s1020_s12 + $0x8] sm:$0xff] %v701_v28  }
  0xc0   : > { %s1100_s30 = smov (!%p383_p9, %s382_s30), 4 }
  0xc1   : > { %s665_s9 = sshll.u32 %s1100_s30, 2 }
  0xc2   : > { %p668_p10 = scmp.eq.s32.totalorder %s665_s9, 0 }
  0xc3   : > { %s1037_s10 = sshrl.u32 (!%p668_p10), %s1100_s30, 2 }
  0xc4   : > { %391 = sbr.rel (%p668_p10) target bundleno = 232 (0xe8), region = 48  ;;  %p669_p11 = scmp.le.s32.totalorder (!%p668_p10), %s1037_s10, 0 }
  0xc9   : > { %563 = sbr.rel (%p669_p11) target bundleno = 215 (0xd7), region = 121  ;;  %s1090_s14 = smov (!%p669_p11), %s1031_s8 }
  0xca   : > { %s1091_s20 = smov (!%p669_p11), %s1020_s12  ;;  %s1046_s4 = smov (!%p669_p11), 0  }
  0xcb   : > { %s901_s11 = smov (!%p669_p11), 0  }
  0xce LB: >> { %v408_v29 = vld [vmem:[%s895_s20] sm:$0xf]  ;;  %v410_v30 = vld [vmem:[%s895_s20 + $0x4] sm:$0xf]  ;;  %v412_v31 = vld [vmem:[%s895_s20 + $0x8] sm:$0xf]  ;;  %s903_s11 = sphi %s901_s11, %s402_s11   ;;  %s899_s4 = sphi %s1046_s4, %s1092_s4   ;;  %s895_s20 = sphi %s1091_s20, %s421_s20   ;;  %s891_s14 = sphi %s1090_s14, %s422_s14  }
  0xcf   : >> { %409 = vst [vmem:[%s891_s14] sm:$0xf] %v408_v29  ;;  %v414_v32 = vld [vmem:[%s895_s20 + $0xc] sm:$0xf]  ;;  %s416_s17 = sadd.s32 1, %s899_s4  ;;  %s402_s11 = sadd.s32 1, %s903_s11  }
  0xd0   : >> { %411 = vst [vmem:[%s891_s14 + $0x4] sm:$0xf] %v410_v30  ;;  %p417_p12 = scmp.ge.s32.totalorder %s416_s17, %s1037_s10  ;;  %p401_p13 = scmp.ge.s32.totalorder %s402_s11, %s1037_s10 }
  0xd1   : >> { %413 = vst [vmem:[%s891_s14 + $0x8] sm:$0xf] %v412_v31 }
  0xd2   : >> { %415 = vst [vmem:[%s891_s14 + $0xc] sm:$0xf] %v414_v32  ;;  %s1102_s17 = smov (%p417_p12, %s416_s17), 0  ;;  %404 = sbr.rel (!%p401_p13) target bundleno = 206 (0xce), region = 127 }
  0xd3   : >> { %s670_s19 = sshll.u32 %s1102_s17, 4  ;;  %s1092_s4 = smov %s1102_s17 }
  0xd4   : >> { %s421_s20 = scalar_lea.vmem %s1020_s12, %s670_s19 [#allocation3]   ;;  %s422_s14 = scalar_lea.vmem %s1031_s8, %s670_s19  }
  0xd7 PF: > { %s1062_s21 = sand.u32 3, %s1100_s30   ;;  %s691_s23 = sshll.u32 %s1037_s10, 4 }
  0xd8   : > { %s427_s24 = scalar_lea.vmem %s1020_s12, %s691_s23 [#allocation3]   ;;  %s429_s25 = scalar_lea.vmem %s1031_s8, %s691_s23  }
  0xd9   : > { %p675_p0 = scmp.le.s32.totalorder %s1062_s21, 0 }
  0xda   : > { %s905_s26 = smov (!%p675_p0), %s429_s25   ;;  %s909_s27 = smov (!%p675_p0), %s427_s24  }
  0xdb   : > { %577 = sbr.rel (%p675_p0) target bundleno = 232 (0xe8), region = 132  ;;  %s913_s28 = smov (!%p675_p0), 0  }
  0xdc   : > { %s917_s29 = smov (!%p675_p0), 0  }
  0xe0 LB: >> { %v439_v33 = vld [vmem:[%s911_s27] sm:$0xf]  ;;  %s441_s30 = sadd.s32 1, %s915_s28  ;;  %s433_s29 = sadd.s32 1, %s919_s29   ;;  %s919_s29 = sphi %s917_s29, %s433_s29   ;;  %s915_s28 = sphi %s913_s28, %s914_s28   ;;  %s911_s27 = sphi %s909_s27, %s446_s27   ;;  %s907_s26 = sphi %s905_s26, %s447_s26  }
  0xe1   : >> { %440 = vst [vmem:[%s907_s26] sm:$0xf] %v439_v33  ;;  %p442_p1 = scmp.ge.s32.totalorder %s441_s30, %s1062_s21  ;;  %p432_p2 = scmp.ge.s32.totalorder %s433_s29, %s1062_s21 }
  0xe3   : >> { %s1104_s30 = smov (%p442_p1, %s441_s30), 0  ;;  %435 = sbr.rel (!%p432_p2) target bundleno = 224 (0xe0), region = 138 }
  0xe4   : >> { %s676_s12 = sshll.u32 %s1104_s30, 2  ;;  %s914_s28 = smov %s1104_s30  }
  0xe5   : >> { %s446_s27 = scalar_lea.vmem %s427_s24, %s676_s12 [#allocation3]   ;;  %s447_s26 = scalar_lea.vmem %s429_s25, %s676_s12  }
  0xe8 PF: > { %s13_s16 = sadd.s32 1, %s887_s16   ;;  %s1093_s12 = smov %s875_s13 }
  0xe9   : > { %p10_p3 = scmp.ge.s32.totalorder %s13_s16, 4   ;;  %s1094_s13 = smov %s982_s22 }
  0xea   : > { %s1095_s14 = smov %s883_s15  ;;  %s1096_s15 = smov %s1098_s18 }
  0xeb   :  { %12 = sbr.rel (!%p10_p3) target bundleno = 3 (0x3), region = 149 }

// kernel: _lambda_.7
= control target key start
LH: loop header
LB: loop body
LE: loop exit
PB: predicated region body
PF: predicated region fallthrough
CT: control target
= control target key end

     0   :  { %s1024_s12 = smov 0   ;;  %s1026_s13 = smov 0   ;;  %s1176_s0 = inlined_call_operand.vmem [shape: bf16[18,256], index: 0, kind: input, shape index: {}]   ;;  %s1177_s1 = inlined_call_operand.vmem [shape: bf16[256,128], index: 1, kind: input, shape index: {}]   ;;  %s1178_s2 = inlined_call_operand.vmem [shape: f32[1,128], index: 2, kind: input, shape index: {}]   ;;  %s1179_s3 = inlined_call_operand.vmem [shape: bf16[18,128], index: 3, kind: output, shape index: {}]  }
   0x1   :  { %s1028_s14 = smov 0   ;;  %s1030_s15 = smov 0  }
   0x2   :  { %s1032_s16 = smov 0  }
   0x3 LB: > { %s670_s17 = sadd.s32 4294967295, %s970_s16   ;;  %s25_s18 = sadd.s32 1, %s966_s15  ;;  %s970_s16 = sphi %s1032_s16, %s13_s16   ;;  %s966_s15 = sphi %s1030_s15, %s1184_s15   ;;  %s962_s14 = sphi %s1028_s14, %s1183_s14   ;;  %s958_s13 = sphi %s1026_s13, %s1182_s13   ;;  %s954_s12 = sphi %s1024_s12, %s1181_s12  }
   0x4   : > { %p27_p0 = scmp.ge.s32.totalorder %s25_s18, 2  ;;  %s102_s19 = sadd.s32 1, %s958_s13 }
   0x5   : > { %p112_p1 = scmp.ne.s32.totalorder %s958_s13, %s954_s12  ;;  %p113_p2 = scmp.eq.s32.totalorder %s670_s17, 1 }
   0x6   : > { %s1186_s18 = smov (%p27_p0, %s25_s18), 0  ;;  %p674_p4 = scmp.ge.s32.totalorder %s970_s16, 1 }
   0x7   : > { %p1056_p3 = por %p113_p2, %p112_p1  ;;  %s99_s21 = ssub.s32 %s966_s15, %s1186_s18 }
   0x8   : > { %p168_p5 = scmp.lt.s32.totalorder %s970_s16, 3  ;;  %p100_p6 = scmp.eq.s32.totalorder %s99_s21, 0 }
   0xa   : > { %p169_p7 = pnand %p674_p4, %p168_p5 }
   0xb   : > { %s1065_s22 = scalar_select %p100_p6, %s958_s13, %s102_s19  }
   0xc   : > { %172 = sbr.rel (%p169_p7) target bundleno = 233 (0xe9), region = 32  ;;  %s1086_s8 = sshll.u32 (!%p169_p7), %s962_s14, 1 }
   0xd   : > { %p208_p8 = scmp.lt.s32.totalorder (!%p169_p7), %s1086_s8, 2  ;;  %s198_s26 = sand.u32 (!%p169_p7), 1, %s954_s12  }
   0xe   : > { %s675_s27 = sshll.u32 (!%p169_p7), %s198_s26, 3 }
   0xf   : > { %s1127_s28 = scalar_lea.vmem (!%p169_p7), [#allocation3], %s675_s27  }
  0x11   : > { %v778_v0 = vld [vmem:[%s1177_s1 + $0x38] sm:$0xff]  ;;  %v777_v2 = vld [vmem:[%s1177_s1 + $0x30] sm:$0xff]  ;;  %v776_v4 = vld [vmem:[%s1177_s1 + $0x28] sm:$0xff]  ;;  %s209_s25 = scalar_select %p208_p8, %s1086_s8, 2 }
  0x12   : > { %v786_v1 = vld [vmem:[%s1177_s1 + $0x78] sm:$0xff]  ;;  %381 = vmatpush.bf16.msra.mxu0 %v778_v0  ;;  %v785_v3 = vld [vmem:[%s1177_s1 + $0x70] sm:$0xff]  ;;  %v784_v5 = vld [vmem:[%s1177_s1 + $0x68] sm:$0xff]  ;;  %s442_s12 = ssub.s32 (%p1056_p3), 3, %s1086_s8  ;;  %s787_s29 = sshll.u32 (%p1056_p3), %s962_s14, 3 }
  0x13   : > { %395 = vmatpush.bf16.msra.mxu1 %v786_v1  ;;  %v775_v6 = vld [vmem:[%s1177_s1 + $0x20] sm:$0xff]  ;;  %v774_v8 = vld [vmem:[%s1177_s1 + $0x18] sm:$0xff]  ;;  %v773_v10 = vld [vmem:[%s1177_s1 + $0x10] sm:$0xff]  ;;  %s768_s30 = sshll.u32 %s209_s25, 3  ;;  %p443_p9 = scmp.lt.s32.totalorder (%p1056_p3), %s442_s12, 2 }
  0x14   : > { %v783_v7 = vld [vmem:[%s1177_s1 + $0x60] sm:$0xff]  ;;  %v782_v9 = vld [vmem:[%s1177_s1 + $0x58] sm:$0xff]  ;;  %v781_v11 = vld [vmem:[%s1177_s1 + $0x50] sm:$0xff]  ;;  %s215_s11 = scalar_lea.vmem %s1176_s0, %s768_s30  ;;  %s1137_s5 = scalar_lea.vmem (%p1056_p3), %s1179_s3, %s787_s29  }
  0x15   : > { %v772_v12 = vld [vmem:[%s1177_s1 + $0x8] sm:$0xff]  ;;  %v771_v14 = vld [vmem:[%s1177_s1] sm:$0xff] }
  0x16   : > { %382 = vmatpush.bf16.msra.mxu0 %v777_v2  ;;  %v780_v13 = vld [vmem:[%s1177_s1 + $0x48] sm:$0xff]  ;;  %v779_v15 = vld [vmem:[%s1177_s1 + $0x40] sm:$0xff] }
  0x17   : > { %396 = vmatpush.bf16.msra.mxu1 %v785_v3  ;;  %v681_v16 = vld [vmem:[%s215_s11] sm:$0xf]  ;;  %v770_v17 = vld [vmem:[%s215_s11 + $0x4] sm:$0xf0]  ;;  %v769_v18 = vld [vmem:[%s215_s11 + $0x4] sm:$0xf] }
  0x18   : > { %v683_v19 = vld [vmem:[%s215_s11 + $0x8] sm:$0xf0]  ;;  %v682_v20 = vor.u32 %v770_v17, %v681_v16  ;;  %v899_v25 = vld [vmem:[%s1178_s2] ss:$0 sm:$0xff] }
  0x19   : > { %v686_v21 = vor.u32 %v769_v18, %v683_v19 }
  0x1a   : > { %383 = vmatpush.bf16.msra.mxu0 %v776_v4 }
  0x1b   : > { %397 = vmatpush.bf16.msra.mxu1 %v784_v5 }
  0x1e   : > { %384 = vmatpush.bf16.msra.mxu0 %v775_v6 }
  0x1f   : > { %398 = vmatpush.bf16.msra.mxu1 %v783_v7 }
  0x22   : > { %385 = vmatpush.bf16.msra.mxu0 %v774_v8 }
  0x23   : > { %399 = vmatpush.bf16.msra.mxu1 %v782_v9 }
  0x26   : > { %386 = vmatpush.bf16.msra.mxu0 %v773_v10 }
  0x27   : > { %400 = vmatpush.bf16.msra.mxu1 %v781_v11 }
  0x2a   : > { %387 = vmatpush.bf16.msra.mxu0 %v772_v12 }
  0x2b   : > { %401 = vmatpush.bf16.msra.mxu1 %v780_v13 }
  0x2e   : > { %388 = vmatpush.bf16.msra.mxu0 %v771_v14 }
  0x2f   : > { %402 = vmatpush.bf16.msra.mxu1 %v779_v15 }
  0x31   : > { %389 = vmatmul.bf16.vlgmr.msra.gmra.mxu0 %v682_v20 }
  0x32   : > { %403 = vmatmul.bf16.vlgmr.msra.gmra.mxu1 %v686_v21 }
  0xae   : > { %v390_v22 = vpop.f32.mrf.mxu0 }
  0xaf   : > { %v404_v23 = vpop.f32.mrf.mxu1 }
  0xb0   : > { %v405_v24 = vadd.f32 %v404_v23, %v390_v22 }
  0xb2   : > { %v422_v26 = vadd.f32 %v899_v25, %v405_v24 }
  0xb4   : > { %v426_v30 = vmul.f32 0.2, %v422_v26  ;;  %vm424_vm0 = vcmp.ge.f32.partialorder %v422_v26, 0.0 }
  0xb6   : > { %v392_v27 = vpop.f32.mrf.mxu0  ;;  %v428_v33 = vsel %vm424_vm0, %v422_v26, %v426_v30 }
  0xb7   : > { %v406_v28 = vpop.f32.mrf.mxu1 }
  0xb8   : > { %v407_v29 = vadd.f32 %v406_v28, %v392_v27 }
  0xba   : > { %v423_v31 = vadd.f32 %v899_v25, %v407_v29 }
  0xbc   : > { %vm425_vm1 = vcmp.ge.f32.partialorder %v423_v31, 0.0  ;;  %v427_v32 = vmul.f32 0.2, %v423_v31 }
  0xbd   : > { %440 = sbr.rel (!%p1056_p3) target bundleno = 233 (0xe9), region = 44 }
  0xbe   : > { %v429_v34 = vsel %vm425_vm1, %v423_v31, %v427_v32 }
  0xbf   : > { %v793_v35 = vpack.c.bf16 %v429_v34, %v428_v33 }
  0xc1   : > { %794 = vst [vmem:[%s1127_s28] sm:$0xff] %v793_v35  }
  0xc2   : > { %s1188_s12 = smov (!%p443_p9, %s442_s12), 2 }
  0xc3   : > { %s753_s6 = sshll.u32 %s1188_s12, 2 }
  0xc4   : > { %p756_p10 = scmp.eq.s32.totalorder %s753_s6, 0 }
  0xc5   : > { %s1143_s7 = sshrl.u32 (!%p756_p10), %s1188_s12, 1 }
  0xc6   : > { %451 = sbr.rel (%p756_p10) target bundleno = 233 (0xe9), region = 48  ;;  %p757_p11 = scmp.le.s32.totalorder (!%p756_p10), %s1143_s7, 0 }
  0xcb   : > { %618 = sbr.rel (%p757_p11) target bundleno = 216 (0xd8), region = 121  ;;  %s972_s14 = smov (!%p757_p11), %s1137_s5  }
  0xcc   : > { %s976_s20 = smov (!%p757_p11), %s1127_s28   ;;  %s980_s8 = smov (!%p757_p11), 0  }
  0xcd   : > { %s984_s9 = smov (!%p757_p11), 0  }
  0xd0 LB: >> { %v468_v36 = vld [vmem:[%s978_s20] sm:$0xf]  ;;  %v470_v37 = vld [vmem:[%s978_s20 + $0x4] sm:$0xf]  ;;  %s472_s10 = sadd.s32 1, %s982_s8  ;;  %s462_s9 = sadd.s32 1, %s986_s9   ;;  %s986_s9 = sphi %s984_s9, %s462_s9   ;;  %s982_s8 = sphi %s980_s8, %s981_s8   ;;  %s978_s20 = sphi %s976_s20, %s477_s20   ;;  %s974_s14 = sphi %s972_s14, %s478_s14  }
  0xd1   : >> { %469 = vst [vmem:[%s974_s14] sm:$0xf] %v468_v36  ;;  %p473_p12 = scmp.ge.s32.totalorder %s472_s10, %s1143_s7  ;;  %p461_p13 = scmp.ge.s32.totalorder %s462_s9, %s1143_s7 }
  0xd2   : >> { %471 = vst [vmem:[%s974_s14 + $0x4] sm:$0xf] %v470_v37 }
  0xd3   : >> { %s1190_s10 = smov (%p473_p12, %s472_s10), 0  ;;  %464 = sbr.rel (!%p461_p13) target bundleno = 208 (0xd0), region = 127 }
  0xd4   : >> { %s758_s11 = sshll.u32 %s1190_s10, 3  ;;  %s981_s8 = smov %s1190_s10  }
  0xd5   : >> { %s477_s20 = scalar_lea.vmem %s1127_s28, %s758_s11 [#allocation3]   ;;  %s478_s14 = scalar_lea.vmem %s1137_s5, %s758_s11  }
  0xd8 PF: > { %s1153_s17 = sand.u32 1, %s1188_s12   ;;  %s788_s19 = sshll.u32 %s1143_s7, 3 }
  0xd9   : > { %s483_s21 = scalar_lea.vmem %s1127_s28, %s788_s19 [#allocation3]   ;;  %s485_s23 = scalar_lea.vmem %s1137_s5, %s788_s19  }
  0xda   : > { %p763_p0 = scmp.le.s32.totalorder %s1153_s17, 0 }
  0xdb   : > { %s988_s24 = smov (!%p763_p0), %s485_s23   ;;  %s992_s25 = smov (!%p763_p0), %s483_s21  }
  0xdc   : > { %632 = sbr.rel (%p763_p0) target bundleno = 233 (0xe9), region = 132  ;;  %s996_s26 = smov (!%p763_p0), 0  }
  0xdd   : > { %s1000_s27 = smov (!%p763_p0), 0  }
  0xe1 LB: >> { %v495_v38 = vld [vmem:[%s994_s25] sm:$0xf]  ;;  %s497_s12 = sadd.s32 1, %s998_s26  ;;  %s489_s27 = sadd.s32 1, %s1002_s27   ;;  %s1002_s27 = sphi %s1000_s27, %s489_s27   ;;  %s998_s26 = sphi %s996_s26, %s997_s26   ;;  %s994_s25 = sphi %s992_s25, %s502_s25   ;;  %s990_s24 = sphi %s988_s24, %s503_s24  }
  0xe2   : >> { %496 = vst [vmem:[%s990_s24] sm:$0xf] %v495_v38  ;;  %p498_p1 = scmp.ge.s32.totalorder %s497_s12, %s1153_s17  ;;  %p488_p2 = scmp.ge.s32.totalorder %s489_s27, %s1153_s17 }
  0xe4   : >> { %s1192_s12 = smov (%p498_p1, %s497_s12), 0  ;;  %491 = sbr.rel (!%p488_p2) target bundleno = 225 (0xe1), region = 138 }
  0xe5   : >> { %s764_s28 = sshll.u32 %s1192_s12, 2  ;;  %s997_s26 = smov %s1192_s12  }
  0xe6   : >> { %s502_s25 = scalar_lea.vmem %s483_s21, %s764_s28 [#allocation3]   ;;  %s503_s24 = scalar_lea.vmem %s485_s23, %s764_s28  }
  0xe9 PF: > { %s13_s16 = sadd.s32 1, %s970_s16   ;;  %s1181_s12 = smov %s958_s13 }
  0xea   : > { %p10_p3 = scmp.ge.s32.totalorder %s13_s16, 4   ;;  %s1182_s13 = smov %s1065_s22 }
  0xeb   : > { %s1183_s14 = smov %s966_s15  ;;  %s1184_s15 = smov %s1186_s18 }
  0xec   :  { %12 = sbr.rel (!%p10_p3) target bundleno = 3 (0x3), region = 149 }

// kernel: _lambda_.8
= control target key start
LH: loop header
LB: loop body
LE: loop exit
PB: predicated region body
PF: predicated region fallthrough
CT: control target
= control target key end

     0   :  { %s919_s12 = smov 0   ;;  %s921_s13 = smov 0   ;;  %s1058_s0 = inlined_call_operand.vmem [shape: bf16[32,512], index: 0, kind: input, shape index: {}]   ;;  %s1059_s1 = inlined_call_operand.vmem [shape: bf16[512,128], index: 1, kind: input, shape index: {}]   ;;  %s1060_s2 = inlined_call_operand.vmem [shape: f32[1,128], index: 2, kind: input, shape index: {}]   ;;  %s1061_s3 = inlined_call_operand.vmem [shape: bf16[32,128], index: 3, kind: output, shape index: {}]  }
   0x1   :  { %s923_s14 = smov 0  }
   0x2 LB: > { %s25_s15 = sadd.s32 1, %s893_s13  ;;  %p656_p0 = scmp.ge.s32.totalorder %s897_s14, 1  ;;  %s897_s14 = sphi %s923_s14, %s13_s14   ;;  %s893_s13 = sphi %s921_s13, %s1063_s13   ;;  %s889_s12 = sphi %s919_s12, %s1062_s12  }
   0x3   : > { %p27_p1 = scmp.ge.s32.totalorder %s25_s15, 2  ;;  %p158_p2 = scmp.lt.s32.totalorder %s897_s14, 3 }
   0x5   : > { %s1065_s15 = smov (%p27_p1, %s25_s15), 0  ;;  %p159_p3 = pnand %p656_p0, %p158_p2 }
   0x6   : > { %s657_s17 = sshll.u32 (!%p159_p3), %s889_s12, 1 }
   0x7   : > { %162 = sbr.rel (%p159_p3) target bundleno = 198 (0xc6), region = 32  ;;  %p189_p4 = scmp.lt.s32.totalorder (!%p159_p3), %s657_s17, 3 }
   0xc   : > { %v820_v0 = vld [vmem:[%s1059_s1 + $0x38] sm:$0xff]  ;;  %v819_v4 = vld [vmem:[%s1059_s1 + $0x30] sm:$0xff]  ;;  %v818_v8 = vld [vmem:[%s1059_s1 + $0x28] sm:$0xff]  ;;  %s1067_s17 = smov (!%p189_p4, %s657_s17), 3 }
   0xd   : > { %v828_v1 = vld [vmem:[%s1059_s1 + $0x78] sm:$0xff]  ;;  %498 = vmatpush.bf16.msra.mxu0 %v820_v0  ;;  %v827_v5 = vld [vmem:[%s1059_s1 + $0x70] sm:$0xff]  ;;  %v826_v9 = vld [vmem:[%s1059_s1 + $0x68] sm:$0xff]  ;;  %s808_s19 = sshll.u32 %s1067_s17, 4  ;;  %s661_s18 = sshll.u32 %s1067_s17, 2 }
   0xe   : > { %v836_v2 = vld [vmem:[%s1059_s1 + $0xb8] sm:$0xff]  ;;  %512 = vmatpush.bf16.msra.mxu1 %v828_v1  ;;  %v835_v6 = vld [vmem:[%s1059_s1 + $0xb0] sm:$0xff]  ;;  %v834_v10 = vld [vmem:[%s1059_s1 + $0xa8] sm:$0xff]  ;;  %s196_s12 = scalar_lea.vmem %s1058_s0, %s808_s19  ;;  %s203_s21 = scalar_lea.vmem %s1061_s3, %s661_s18 }
   0xf   : > { %v844_v3 = vld [vmem:[%s1059_s1 + $0xf8] sm:$0xff]  ;;  %526 = vmatpush.bf16.msra.mxu2 %v836_v2  ;;  %v843_v7 = vld [vmem:[%s1059_s1 + $0xf0] sm:$0xff]  ;;  %v842_v11 = vld [vmem:[%s1059_s1 + $0xe8] sm:$0xff] }
  0x10   : > { %540 = vmatpush.bf16.msra.mxu3 %v844_v3  ;;  %v817_v12 = vld [vmem:[%s1059_s1 + $0x20] sm:$0xff]  ;;  %v816_v16 = vld [vmem:[%s1059_s1 + $0x18] sm:$0xff]  ;;  %v815_v20 = vld [vmem:[%s1059_s1 + $0x10] sm:$0xff] }
  0x11   : > { %499 = vmatpush.bf16.msra.mxu0 %v819_v4  ;;  %v825_v13 = vld [vmem:[%s1059_s1 + $0x60] sm:$0xff]  ;;  %v824_v17 = vld [vmem:[%s1059_s1 + $0x58] sm:$0xff]  ;;  %v823_v21 = vld [vmem:[%s1059_s1 + $0x50] sm:$0xff] }
  0x12   : > { %513 = vmatpush.bf16.msra.mxu1 %v827_v5  ;;  %v833_v14 = vld [vmem:[%s1059_s1 + $0xa0] sm:$0xff]  ;;  %v832_v18 = vld [vmem:[%s1059_s1 + $0x98] sm:$0xff]  ;;  %v831_v22 = vld [vmem:[%s1059_s1 + $0x90] sm:$0xff] }
  0x13   : > { %527 = vmatpush.bf16.msra.mxu2 %v835_v6  ;;  %v841_v15 = vld [vmem:[%s1059_s1 + $0xe0] sm:$0xff]  ;;  %v840_v19 = vld [vmem:[%s1059_s1 + $0xd8] sm:$0xff]  ;;  %v839_v23 = vld [vmem:[%s1059_s1 + $0xd0] sm:$0xff] }
  0x14   : > { %541 = vmatpush.bf16.msra.mxu3 %v843_v7  ;;  %v814_v24 = vld [vmem:[%s1059_s1 + $0x8] sm:$0xff]  ;;  %v813_v28 = vld [vmem:[%s1059_s1] sm:$0xff]  ;;  %v811_v33 = vld [vmem:[%s196_s12 + $0xc] sm:$0xf0] }
  0x15   : > { %500 = vmatpush.bf16.msra.mxu0 %v818_v8  ;;  %v822_v25 = vld [vmem:[%s1059_s1 + $0x48] sm:$0xff]  ;;  %v821_v29 = vld [vmem:[%s1059_s1 + $0x40] sm:$0xff]  ;;  %v666_v35 = vld [vmem:[%s196_s12 + $0x10] sm:$0xf0] }
  0x16   : > { %514 = vmatpush.bf16.msra.mxu1 %v826_v9  ;;  %v830_v26 = vld [vmem:[%s1059_s1 + $0x88] sm:$0xff]  ;;  %v829_v30 = vld [vmem:[%s1059_s1 + $0x80] sm:$0xff]  ;;  %v812_v37 = vld [vmem:[%s196_s12 + $0x14] sm:$0xf0] }
  0x17   : > { %528 = vmatpush.bf16.msra.mxu2 %v834_v10  ;;  %v838_v27 = vld [vmem:[%s1059_s1 + $0xc8] sm:$0xff]  ;;  %v837_v31 = vld [vmem:[%s1059_s1 + $0xc0] sm:$0xff]  ;;  %v674_v39 = vld [vmem:[%s196_s12 + $0x18] sm:$0xf0] }
  0x18   : > { %542 = vmatpush.bf16.msra.mxu3 %v842_v11  ;;  %v664_v32 = vld [vmem:[%s196_s12] sm:$0xf]  ;;  %v809_v34 = vld [vmem:[%s196_s12 + $0x4] sm:$0xf]  ;;  %v672_v36 = vld [vmem:[%s196_s12 + $0x8] sm:$0xf] }
  0x19   : > { %501 = vmatpush.bf16.msra.mxu0 %v817_v12  ;;  %v810_v38 = vld [vmem:[%s196_s12 + $0xc] sm:$0xf]  ;;  %v665_v40 = vor.u32 %v811_v33, %v664_v32  ;;  %v669_v41 = vor.u32 %v809_v34, %v666_v35  ;;  %v673_v42 = vor.u32 %v812_v37, %v672_v36  ;;  %v874_v53 = vld [vmem:[%s1060_s2] ss:$0 sm:$0xff] }
  0x1a   : > { %515 = vmatpush.bf16.msra.mxu1 %v825_v13  ;;  %v677_v43 = vor.u32 %v810_v38, %v674_v39 }
  0x1b   : > { %529 = vmatpush.bf16.msra.mxu2 %v833_v14 }
  0x1c   : > { %543 = vmatpush.bf16.msra.mxu3 %v841_v15 }
  0x1d   : > { %502 = vmatpush.bf16.msra.mxu0 %v816_v16 }
  0x1e   : > { %516 = vmatpush.bf16.msra.mxu1 %v824_v17 }
  0x1f   : > { %530 = vmatpush.bf16.msra.mxu2 %v832_v18 }
  0x20   : > { %544 = vmatpush.bf16.msra.mxu3 %v840_v19 }
  0x21   : > { %503 = vmatpush.bf16.msra.mxu0 %v815_v20 }
  0x22   : > { %517 = vmatpush.bf16.msra.mxu1 %v823_v21 }
  0x23   : > { %531 = vmatpush.bf16.msra.mxu2 %v831_v22 }
  0x24   : > { %545 = vmatpush.bf16.msra.mxu3 %v839_v23 }
  0x25   : > { %504 = vmatpush.bf16.msra.mxu0 %v814_v24 }
  0x26   : > { %518 = vmatpush.bf16.msra.mxu1 %v822_v25 }
  0x27   : > { %532 = vmatpush.bf16.msra.mxu2 %v830_v26 }
  0x28   : > { %546 = vmatpush.bf16.msra.mxu3 %v838_v27 }
  0x29   : > { %505 = vmatpush.bf16.msra.mxu0 %v813_v28 }
  0x2a   : > { %519 = vmatpush.bf16.msra.mxu1 %v821_v29 }
  0x2b   : > { %533 = vmatpush.bf16.msra.mxu2 %v829_v30 }
  0x2c   : > { %547 = vmatpush.bf16.msra.mxu3 %v837_v31  ;;  %506 = vmatmul.bf16.vlgmr.msra.gmra.mxu0 %v665_v40 }
  0x2d   : > { %520 = vmatmul.bf16.vlgmr.msra.gmra.mxu1 %v669_v41 }
  0x2e   : > { %534 = vmatmul.bf16.vlgmr.msra.gmra.mxu2 %v673_v42 }
  0x2f   : > { %548 = vmatmul.bf16.vlgmr.msra.gmra.mxu3 %v677_v43 }
  0xa9   : > { %v507_v44 = vpop.f32.mrf.mxu0 }
  0xaa   : > { %v521_v45 = vpop.f32.mrf.mxu1 }
  0xab   : > { %v522_v46 = vadd.f32 %v521_v45, %v507_v44 }
  0xb1   : > { %v535_v47 = vpop.f32.mrf.mxu2  ;;  %v509_v50 = vpop.f32.mrf.mxu0 }
  0xb2   : > { %v549_v48 = vpop.f32.mrf.mxu3  ;;  %v536_v49 = vadd.f32 %v535_v47, %v522_v46  ;;  %v523_v51 = vpop.f32.mrf.mxu1 }
  0xb3   : > { %v524_v54 = vadd.f32 %v523_v51, %v509_v50 }
  0xb4   : > { %v550_v52 = vadd.f32 %v549_v48, %v536_v49 }
  0xb6   : > { %v567_v56 = vadd.f32 %v874_v53, %v550_v52 }
  0xb8   : > { %v571_v60 = vmul.f32 0.2, %v567_v56  ;;  %vm569_vm0 = vcmp.ge.f32.partialorder %v567_v56, 0.0 }
  0xb9   : > { %v537_v55 = vpop.f32.mrf.mxu2 }
  0xba   : > { %v538_v57 = vadd.f32 %v537_v55, %v524_v54  ;;  %v551_v58 = vpop.f32.mrf.mxu3  ;;  %v573_v63 = vsel %vm569_vm0, %v567_v56, %v571_v60 }
  0xbc   : > { %v552_v59 = vadd.f32 %v551_v58, %v538_v57 }
  0xbe   : > { %v568_v61 = vadd.f32 %v874_v53, %v552_v59 }
  0xc0   : > { %vm570_vm1 = vcmp.ge.f32.partialorder %v568_v61, 0.0  ;;  %v572_v62 = vmul.f32 0.2, %v568_v61 }
  0xc2   : > { %v574_v0 = vsel %vm570_vm1, %v568_v61, %v572_v62 }
  0xc3   : > { %v848_v1 = vpack.c.bf16 %v574_v0, %v573_v63 }
  0xc5   : > { %849 = vst [vmem:[%s203_s21] sm:$0xff] %v848_v1  }
  0xc6 PF: > { %s13_s14 = sadd.s32 1, %s897_s14   ;;  %s1062_s12 = smov %s893_s13 }
  0xc7   : > { %p10_p5 = scmp.ge.s32.totalorder %s13_s14, 4   ;;  %s1063_s13 = smov %s1065_s15 }
  0xc9   :  { %12 = sbr.rel (!%p10_p5) target bundleno = 2 (0x2), region = 71 }

// kernel: _lambda_.9
= control target key start
LH: loop header
LB: loop body
LE: loop exit
PB: predicated region body
PF: predicated region fallthrough
CT: control target
= control target key end

     0   :  { %s1935_s12 = smov 0   ;;  %s1937_s13 = smov 0   ;;  %s2283_s0 = inlined_call_operand.vmem [shape: bf16[50,1024], index: 0, kind: input, shape index: {}]   ;;  %s2284_s1 = inlined_call_operand.vmem [shape: bf16[1024,128], index: 1, kind: input, shape index: {}]   ;;  %s2285_s2 = inlined_call_operand.vmem [shape: f32[1,128], index: 2, kind: input, shape index: {}]   ;;  %s2286_s3 = inlined_call_operand.vmem [shape: f32[50,128], index: 3, kind: output, shape index: {}]  }
   0x1   :  { %s1939_s14 = smov 0   ;;  %s1941_s15 = smov 0  }
   0x2   :  { %s1943_s16 = smov 0  }
   0x3 LB: > { %s1276_s17 = sadd.s32 4294967295, %s1881_s16   ;;  %s25_s18 = sadd.s32 1, %s1877_s15  ;;  %s1881_s16 = sphi %s1943_s16, %s13_s16   ;;  %s1877_s15 = sphi %s1941_s15, %s2294_s15   ;;  %s1873_s14 = sphi %s1939_s14, %s2293_s14   ;;  %s1869_s13 = sphi %s1937_s13, %s2292_s13   ;;  %s1865_s12 = sphi %s1935_s12, %s2291_s12  }
   0x4   : > { %p27_p0 = scmp.ge.s32.totalorder %s25_s18, 2  ;;  %s102_s19 = sadd.s32 1, %s1869_s13 }
   0x5   : > { %p112_p1 = scmp.ne.s32.totalorder %s1869_s13, %s1865_s12  ;;  %p113_p2 = scmp.eq.s32.totalorder %s1276_s17, 1 }
   0x6   : > { %s2296_s18 = smov (%p27_p0, %s25_s18), 0  ;;  %p1280_p4 = scmp.ge.s32.totalorder %s1881_s16, 1 }
   0x7   : > { %p1967_p3 = por %p113_p2, %p112_p1  ;;  %s99_s21 = ssub.s32 %s1877_s15, %s2296_s18 }
   0x8   : > { %p168_p5 = scmp.lt.s32.totalorder %s1881_s16, 3  ;;  %p100_p6 = scmp.eq.s32.totalorder %s99_s21, 0 }
   0xa   : > { %p169_p7 = pnand %p1280_p4, %p168_p5 }
   0xb   : > { %s1976_s22 = scalar_select %p100_p6, %s1869_s13, %s102_s19  }
   0xc   : > { %172 = sbr.rel (%p169_p7) target bundleno = 285 (0x11d), region = 32  ;;  %s2015_s28 = sshll.u32 (!%p169_p7), %s1873_s14, 2 }
   0xd   : > { %p208_p8 = scmp.lt.s32.totalorder (!%p169_p7), %s2015_s28, 6 }
  0x11   : > { %v1646_v0 = vld [vmem:[%s2284_s1 + $0x38] sm:$0xff]  ;;  %v1645_v4 = vld [vmem:[%s2284_s1 + $0x30] sm:$0xff]  ;;  %v1644_v8 = vld [vmem:[%s2284_s1 + $0x28] sm:$0xff]  ;;  %s209_s26 = scalar_select %p208_p8, %s2015_s28, 6 }
  0x12   : > { %v1654_v1 = vld [vmem:[%s2284_s1 + $0x78] sm:$0xff]  ;;  %853 = vmatpush.bf16.msra.mxu0 %v1646_v0  ;;  %v1653_v5 = vld [vmem:[%s2284_s1 + $0x70] sm:$0xff]  ;;  %v1652_v9 = vld [vmem:[%s2284_s1 + $0x68] sm:$0xff]  ;;  %s1703_s11 = sshll.u32 (%p1967_p3), %s1873_s14, 5 }
  0x13   : > { %v1662_v2 = vld [vmem:[%s2284_s1 + $0xb8] sm:$0xff]  ;;  %872 = vmatpush.bf16.msra.mxu1 %v1654_v1  ;;  %v1661_v6 = vld [vmem:[%s2284_s1 + $0xb0] sm:$0xff]  ;;  %v1660_v10 = vld [vmem:[%s2284_s1 + $0xa8] sm:$0xff]  ;;  %s1622_s9 = sshll.u32 %s209_s26, 5  ;;  %s2229_s21 = scalar_lea.vmem (%p1967_p3), %s2286_s3, %s1703_s11  }
  0x14   : > { %v1670_v3 = vld [vmem:[%s2284_s1 + $0xf8] sm:$0xff]  ;;  %891 = vmatpush.bf16.msra.mxu2 %v1662_v2  ;;  %v1669_v7 = vld [vmem:[%s2284_s1 + $0xf0] sm:$0xff]  ;;  %v1668_v11 = vld [vmem:[%s2284_s1 + $0xe8] sm:$0xff]  ;;  %s2064_s24 = scalar_lea.vmem %s2283_s0, %s1622_s9 }
  0x15   : > { %910 = vmatpush.bf16.msra.mxu3 %v1670_v3  ;;  %v1643_v12 = vld [vmem:[%s2284_s1 + $0x20] sm:$0xff]  ;;  %v1642_v16 = vld [vmem:[%s2284_s1 + $0x18] sm:$0xff]  ;;  %v1641_v20 = vld [vmem:[%s2284_s1 + $0x10] sm:$0xff] }
  0x16   : > { %854 = vmatpush.bf16.msra.mxu0 %v1645_v4  ;;  %v1651_v13 = vld [vmem:[%s2284_s1 + $0x60] sm:$0xff]  ;;  %v1650_v17 = vld [vmem:[%s2284_s1 + $0x58] sm:$0xff]  ;;  %v1649_v21 = vld [vmem:[%s2284_s1 + $0x50] sm:$0xff] }
  0x17   : > { %873 = vmatpush.bf16.msra.mxu1 %v1653_v5  ;;  %v1659_v14 = vld [vmem:[%s2284_s1 + $0xa0] sm:$0xff]  ;;  %v1658_v18 = vld [vmem:[%s2284_s1 + $0x98] sm:$0xff]  ;;  %v1657_v22 = vld [vmem:[%s2284_s1 + $0x90] sm:$0xff] }
  0x18   : > { %892 = vmatpush.bf16.msra.mxu2 %v1661_v6  ;;  %v1667_v15 = vld [vmem:[%s2284_s1 + $0xe0] sm:$0xff]  ;;  %v1666_v19 = vld [vmem:[%s2284_s1 + $0xd8] sm:$0xff]  ;;  %v1665_v23 = vld [vmem:[%s2284_s1 + $0xd0] sm:$0xff] }
  0x19   : > { %911 = vmatpush.bf16.msra.mxu3 %v1669_v7  ;;  %v1640_v24 = vld [vmem:[%s2284_s1 + $0x8] sm:$0xff]  ;;  %v1639_v28 = vld [vmem:[%s2284_s1] sm:$0xff]  ;;  %v1694_v40 = vld [vmem:[%s2284_s1 + $0x1b8] sm:$0xff] }
  0x1a   : > { %855 = vmatpush.bf16.msra.mxu0 %v1644_v8  ;;  %v1648_v25 = vld [vmem:[%s2284_s1 + $0x48] sm:$0xff]  ;;  %v1647_v29 = vld [vmem:[%s2284_s1 + $0x40] sm:$0xff]  ;;  %v1678_v41 = vld [vmem:[%s2284_s1 + $0x138] sm:$0xff] }
  0x1b   : > { %874 = vmatpush.bf16.msra.mxu1 %v1652_v9  ;;  %v1656_v26 = vld [vmem:[%s2284_s1 + $0x88] sm:$0xff]  ;;  %v1655_v30 = vld [vmem:[%s2284_s1 + $0x80] sm:$0xff]  ;;  %v1686_v46 = vld [vmem:[%s2284_s1 + $0x178] sm:$0xff] }
  0x1c   : > { %893 = vmatpush.bf16.msra.mxu2 %v1660_v10  ;;  %v1664_v27 = vld [vmem:[%s2284_s1 + $0xc8] sm:$0xff]  ;;  %v1663_v31 = vld [vmem:[%s2284_s1 + $0xc0] sm:$0xff]  ;;  %v1702_v47 = vld [vmem:[%s2284_s1 + $0x1f8] sm:$0xff] }
  0x1d   : > { %912 = vmatpush.bf16.msra.mxu3 %v1668_v11  ;;  %v1287_v32 = vld [vmem:[%s2064_s24] sm:$0xf]  ;;  %v1623_v34 = vld [vmem:[%s2064_s24 + $0x4] sm:$0xf]  ;;  %v1295_v36 = vld [vmem:[%s2064_s24 + $0x8] sm:$0xf] }
  0x1e   : > { %856 = vmatpush.bf16.msra.mxu0 %v1643_v12  ;;  %v1627_v33 = vld [vmem:[%s2064_s24 + $0x1c] sm:$0xf0]  ;;  %v1289_v35 = vld [vmem:[%s2064_s24 + $0x20] sm:$0xf0]  ;;  %v1628_v37 = vld [vmem:[%s2064_s24 + $0x24] sm:$0xf0] }
  0x1f   : > { %875 = vmatpush.bf16.msra.mxu1 %v1651_v13  ;;  %v1624_v38 = vld [vmem:[%s2064_s24 + $0xc] sm:$0xf]  ;;  %v1288_v42 = vor.u32 %v1627_v33, %v1287_v32  ;;  %v1292_v43 = vor.u32 %v1623_v34, %v1289_v35  ;;  %v1296_v44 = vor.u32 %v1628_v37, %v1295_v36  ;;  %v1693_v48 = vld [vmem:[%s2284_s1 + $0x1b0] sm:$0xff]  ;;  %v1691_v56 = vld [vmem:[%s2284_s1 + $0x1a0] sm:$0xff] }
  0x20   : > { %894 = vmatpush.bf16.msra.mxu2 %v1659_v14  ;;  %v1297_v39 = vld [vmem:[%s2064_s24 + $0x28] sm:$0xf0]  ;;  %v1677_v49 = vld [vmem:[%s2284_s1 + $0x130] sm:$0xff]  ;;  %v1675_v57 = vld [vmem:[%s2284_s1 + $0x120] sm:$0xff] }
  0x21   : > { %913 = vmatpush.bf16.msra.mxu3 %v1667_v15  ;;  %v1300_v45 = vor.u32 %v1624_v38, %v1297_v39  ;;  %v1685_v50 = vld [vmem:[%s2284_s1 + $0x170] sm:$0xff]  ;;  %v1692_v52 = vld [vmem:[%s2284_s1 + $0x1a8] sm:$0xff]  ;;  %v1683_v58 = vld [vmem:[%s2284_s1 + $0x160] sm:$0xff] }
  0x22   : > { %857 = vmatpush.bf16.msra.mxu0 %v1642_v16  ;;  %v1701_v51 = vld [vmem:[%s2284_s1 + $0x1f0] sm:$0xff]  ;;  %v1676_v53 = vld [vmem:[%s2284_s1 + $0x128] sm:$0xff]  ;;  %v1699_v59 = vld [vmem:[%s2284_s1 + $0x1e0] sm:$0xff] }
  0x23   : > { %876 = vmatpush.bf16.msra.mxu1 %v1650_v17  ;;  %v1684_v54 = vld [vmem:[%s2284_s1 + $0x168] sm:$0xff]  ;;  %v1319_v60 = vld [vmem:[%s2064_s24 + $0x40] sm:$0xf]  ;;  %v1631_v62 = vld [vmem:[%s2064_s24 + $0x44] sm:$0xf] }
  0x24   : > { %895 = vmatpush.bf16.msra.mxu2 %v1658_v18  ;;  %v1700_v55 = vld [vmem:[%s2284_s1 + $0x1e8] sm:$0xff]  ;;  %v1635_v61 = vld [vmem:[%s2064_s24 + $0x5c] sm:$0xf0]  ;;  %v1321_v63 = vld [vmem:[%s2064_s24 + $0x60] sm:$0xf0] }
  0x25   : > { %914 = vmatpush.bf16.msra.mxu3 %v1666_v19  ;;  %v1327_v0 = vld [vmem:[%s2064_s24 + $0x48] sm:$0xf]  ;;  %v1632_v2 = vld [vmem:[%s2064_s24 + $0x4c] sm:$0xf]  ;;  %v1690_v4 = vld [vmem:[%s2284_s1 + $0x198] sm:$0xff]  ;;  %v1320_v6 = vor.u32 %v1635_v61, %v1319_v60  ;;  %v1324_v7 = vor.u32 %v1631_v62, %v1321_v63 }
  0x26   : > { %858 = vmatpush.bf16.msra.mxu0 %v1641_v20  ;;  %v1636_v1 = vld [vmem:[%s2064_s24 + $0x64] sm:$0xf0]  ;;  %v1329_v3 = vld [vmem:[%s2064_s24 + $0x68] sm:$0xf0]  ;;  %v1674_v5 = vld [vmem:[%s2284_s1 + $0x118] sm:$0xff] }
  0x27   : > { %877 = vmatpush.bf16.msra.mxu1 %v1649_v21  ;;  %v1328_v8 = vor.u32 %v1636_v1, %v1327_v0  ;;  %v1332_v9 = vor.u32 %v1632_v2, %v1329_v3  ;;  %v1682_v10 = vld [vmem:[%s2284_s1 + $0x158] sm:$0xff]  ;;  %v1689_v12 = vld [vmem:[%s2284_s1 + $0x190] sm:$0xff]  ;;  %v1688_v16 = vld [vmem:[%s2284_s1 + $0x188] sm:$0xff] }
  0x28   : > { %896 = vmatpush.bf16.msra.mxu2 %v1657_v22  ;;  %v1698_v11 = vld [vmem:[%s2284_s1 + $0x1d8] sm:$0xff]  ;;  %v1673_v13 = vld [vmem:[%s2284_s1 + $0x110] sm:$0xff]  ;;  %v1672_v17 = vld [vmem:[%s2284_s1 + $0x108] sm:$0xff] }
  0x29   : > { %915 = vmatpush.bf16.msra.mxu3 %v1665_v23  ;;  %v1681_v14 = vld [vmem:[%s2284_s1 + $0x150] sm:$0xff]  ;;  %v1680_v18 = vld [vmem:[%s2284_s1 + $0x148] sm:$0xff]  ;;  %v1687_v20 = vld [vmem:[%s2284_s1 + $0x180] sm:$0xff] }
  0x2a   : > { %859 = vmatpush.bf16.msra.mxu0 %v1640_v24  ;;  %v1697_v15 = vld [vmem:[%s2284_s1 + $0x1d0] sm:$0xff]  ;;  %v1696_v19 = vld [vmem:[%s2284_s1 + $0x1c8] sm:$0xff]  ;;  %v1671_v21 = vld [vmem:[%s2284_s1 + $0x100] sm:$0xff] }
  0x2b   : > { %878 = vmatpush.bf16.msra.mxu1 %v1648_v25  ;;  %v1679_v22 = vld [vmem:[%s2284_s1 + $0x140] sm:$0xff]  ;;  %v1303_v24 = vld [vmem:[%s2064_s24 + $0x10] sm:$0xf]  ;;  %v1633_v38 = vld [vmem:[%s2064_s24 + $0x54] sm:$0xf] }
  0x2c   : > { %897 = vmatpush.bf16.msra.mxu2 %v1656_v26  ;;  %v1695_v23 = vld [vmem:[%s2284_s1 + $0x1c0] sm:$0xff]  ;;  %v1629_v25 = vld [vmem:[%s2064_s24 + $0x2c] sm:$0xf0]  ;;  %v1625_v26 = vld [vmem:[%s2064_s24 + $0x14] sm:$0xf] }
  0x2d   : > { %916 = vmatpush.bf16.msra.mxu3 %v1664_v27  ;;  %v1305_v27 = vld [vmem:[%s2064_s24 + $0x30] sm:$0xf0]  ;;  %v1304_v32 = vor.u32 %v1629_v25, %v1303_v24  ;;  %v1335_v36 = vld [vmem:[%s2064_s24 + $0x50] sm:$0xf] }
  0x2e   : > { %860 = vmatpush.bf16.msra.mxu0 %v1639_v28  ;;  %v1311_v28 = vld [vmem:[%s2064_s24 + $0x18] sm:$0xf]  ;;  %v1308_v33 = vor.u32 %v1625_v26, %v1305_v27  ;;  %v1637_v37 = vld [vmem:[%s2064_s24 + $0x6c] sm:$0xf0]  ;;  %v1337_v39 = vld [vmem:[%s2064_s24 + $0x70] sm:$0xf0] }
  0x2f   : > { %879 = vmatpush.bf16.msra.mxu1 %v1647_v29  ;;  %v1630_v29 = vld [vmem:[%s2064_s24 + $0x34] sm:$0xf0] }
  0x30   : > { %898 = vmatpush.bf16.msra.mxu2 %v1655_v30  ;;  %v1626_v30 = vld [vmem:[%s2064_s24 + $0x1c] sm:$0xf]  ;;  %v1312_v34 = vor.u32 %v1630_v29, %v1311_v28 }
  0x31   : > { %917 = vmatpush.bf16.msra.mxu3 %v1663_v31  ;;  %861 = vmatmul.bf16.vlgmr.msra.gmra.mxu0 %v1288_v42  ;;  %v1313_v31 = vld [vmem:[%s2064_s24 + $0x38] sm:$0xf0] }
  0x32   : > { %929 = vmatpush.bf16.msrb.mxu0 %v1678_v41  ;;  %880 = vmatmul.bf16.vlgmr.msra.gmra.mxu1 %v1292_v43  ;;  %v1316_v35 = vor.u32 %v1626_v30, %v1313_v31  ;;  %v1638_v41 = vld [vmem:[%s2064_s24 + $0x74] sm:$0xf0]  ;;  %v1634_v42 = vld [vmem:[%s2064_s24 + $0x5c] sm:$0xf] }
  0x33   : > { %899 = vmatmul.bf16.vlgmr.msra.gmra.mxu2 %v1296_v44  ;;  %948 = vmatpush.bf16.msrb.mxu1 %v1686_v46  ;;  %v1345_v43 = vld [vmem:[%s2064_s24 + $0x78] sm:$0xf0]  ;;  %v1336_v44 = vor.u32 %v1637_v37, %v1335_v36 }
  0x34   : > { %967 = vmatpush.bf16.msrb.mxu2 %v1694_v40  ;;  %918 = vmatmul.bf16.vlgmr.msra.gmra.mxu3 %v1300_v45  ;;  %v1343_v40 = vld [vmem:[%s2064_s24 + $0x58] sm:$0xf]  ;;  %v1340_v45 = vor.u32 %v1633_v38, %v1337_v39  ;;  %s198_s24 = sand.u32 1, %s1865_s12   ;;  %s1040_s12 = ssub.s32 (%p1967_p3), 7, %s2015_s28 }
  0x35   : > { %986 = vmatpush.bf16.msrb.mxu3 %v1702_v47  ;;  %v1344_v46 = vor.u32 %v1638_v41, %v1343_v40  ;;  %v1348_v47 = vor.u32 %v1634_v42, %v1345_v43  ;;  %s1281_s7 = sshll.u32 %s198_s24, 5  ;;  %p1041_p9 = scmp.lt.s32.totalorder (%p1967_p3), %s1040_s12, 4 }
  0x36   : > { %930 = vmatpush.bf16.msrb.mxu0 %v1677_v49  ;;  %s2216_s10 = scalar_lea.vmem [#allocation3], %s1281_s7  }
  0x37   : > { %949 = vmatpush.bf16.msrb.mxu1 %v1685_v50 }
  0x38   : > { %968 = vmatpush.bf16.msrb.mxu2 %v1693_v48 }
  0x39   : > { %987 = vmatpush.bf16.msrb.mxu3 %v1701_v51 }
  0x3a   : > { %931 = vmatpush.bf16.msrb.mxu0 %v1676_v53 }
  0x3b   : > { %950 = vmatpush.bf16.msrb.mxu1 %v1684_v54 }
  0x3c   : > { %969 = vmatpush.bf16.msrb.mxu2 %v1692_v52 }
  0x3d   : > { %988 = vmatpush.bf16.msrb.mxu3 %v1700_v55 }
  0x3e   : > { %932 = vmatpush.bf16.msrb.mxu0 %v1675_v57 }
  0x3f   : > { %951 = vmatpush.bf16.msrb.mxu1 %v1683_v58 }
  0x40   : > { %970 = vmatpush.bf16.msrb.mxu2 %v1691_v56 }
  0x41   : > { %989 = vmatpush.bf16.msrb.mxu3 %v1699_v59  ;;  %866 = vmatmul.bf16.gmra.mxu0 %v1320_v6 }
  0x42   : > { %933 = vmatpush.bf16.msrb.mxu0 %v1674_v5  ;;  %885 = vmatmul.bf16.gmra.mxu1 %v1324_v7 }
  0x43   : > { %904 = vmatmul.bf16.gmra.mxu2 %v1328_v8  ;;  %952 = vmatpush.bf16.msrb.mxu1 %v1682_v10 }
  0x44   : > { %971 = vmatpush.bf16.msrb.mxu2 %v1690_v4  ;;  %923 = vmatmul.bf16.gmra.mxu3 %v1332_v9 }
  0x45   : > { %990 = vmatpush.bf16.msrb.mxu3 %v1698_v11 }
  0x46   : > { %934 = vmatpush.bf16.msrb.mxu0 %v1673_v13  ;;  %v1810_v13 = vld [vmem:[%s2285_s2] ss:$0 sm:$0xff] }
  0x47   : > { %953 = vmatpush.bf16.msrb.mxu1 %v1681_v14 }
  0x48   : > { %972 = vmatpush.bf16.msrb.mxu2 %v1689_v12 }
  0x49   : > { %991 = vmatpush.bf16.msrb.mxu3 %v1697_v15 }
  0x4a   : > { %935 = vmatpush.bf16.msrb.mxu0 %v1672_v17 }
  0x4b   : > { %954 = vmatpush.bf16.msrb.mxu1 %v1680_v18 }
  0x4c   : > { %973 = vmatpush.bf16.msrb.mxu2 %v1688_v16 }
  0x4d   : > { %992 = vmatpush.bf16.msrb.mxu3 %v1696_v19 }
  0x4e   : > { %936 = vmatpush.bf16.msrb.mxu0 %v1671_v21 }
  0x4f   : > { %955 = vmatpush.bf16.msrb.mxu1 %v1679_v22 }
  0x50   : > { %974 = vmatpush.bf16.msrb.mxu2 %v1687_v20 }
  0x51   : > { %993 = vmatpush.bf16.msrb.mxu3 %v1695_v23  ;;  %937 = vmatmul.bf16.vlgmr.msrb.gmra.mxu0 %v1304_v32 }
  0x52   : > { %956 = vmatmul.bf16.vlgmr.msrb.gmra.mxu1 %v1308_v33 }
  0x53   : > { %975 = vmatmul.bf16.vlgmr.msrb.gmra.mxu2 %v1312_v34 }
  0x54   : > { %994 = vmatmul.bf16.vlgmr.msrb.gmra.mxu3 %v1316_v35 }
  0x61   : > { %942 = vmatmul.bf16.gmra.mxu0 %v1336_v44 }
  0x62   : > { %961 = vmatmul.bf16.gmra.mxu1 %v1340_v45 }
  0x63   : > { %980 = vmatmul.bf16.gmra.mxu2 %v1344_v46 }
  0x64   : > { %999 = vmatmul.bf16.gmra.mxu3 %v1348_v47 }
  0xae   : > { %v862_v48 = vpop.f32.mrf.mxu0 }
  0xaf   : > { %v881_v49 = vpop.f32.mrf.mxu1 }
  0xb0   : > { %v882_v62 = vadd.f32 %v881_v49, %v862_v48 }
  0xb6   : > { %v900_v50 = vpop.f32.mrf.mxu2  ;;  %v864_v52 = vpop.f32.mrf.mxu0 }
  0xb7   : > { %v919_v51 = vpop.f32.mrf.mxu3  ;;  %v883_v53 = vpop.f32.mrf.mxu1  ;;  %v901_v63 = vadd.f32 %v900_v50, %v882_v62 }
  0xb8   : > { %v884_v5 = vadd.f32 %v883_v53, %v864_v52 }
  0xb9   : > { %v920_v2 = vadd.f32 %v919_v51, %v901_v63 }
  0xbe   : > { %v902_v54 = vpop.f32.mrf.mxu2  ;;  %v867_v56 = vpop.f32.mrf.mxu0 }
  0xbf   : > { %v921_v55 = vpop.f32.mrf.mxu3  ;;  %v886_v57 = vpop.f32.mrf.mxu1  ;;  %v903_v7 = vadd.f32 %v902_v54, %v884_v5 }
  0xc0   : > { %v887_v16 = vadd.f32 %v886_v57, %v867_v56 }
  0xc1   : > { %v922_v10 = vadd.f32 %v921_v55, %v903_v7 }
  0xc6   : > { %v905_v58 = vpop.f32.mrf.mxu2  ;;  %v869_v60 = vpop.f32.mrf.mxu0 }
  0xc7   : > { %v924_v59 = vpop.f32.mrf.mxu3  ;;  %v888_v61 = vpop.f32.mrf.mxu1  ;;  %v906_v19 = vadd.f32 %v905_v58, %v887_v16 }
  0xc8   : > { %v889_v27 = vadd.f32 %v888_v61, %v869_v60 }
  0xc9   : > { %v925_v23 = vadd.f32 %v924_v59, %v906_v19 }
  0xce   : > { %v907_v0 = vpop.f32.mrf.mxu2  ;;  %v938_v3 = vpop.f32.mrf.mxu0 }
  0xcf   : > { %v926_v1 = vpop.f32.mrf.mxu3  ;;  %v957_v4 = vpop.f32.mrf.mxu1  ;;  %v939_v6 = vadd.f32 %v938_v3, %v920_v2  ;;  %v908_v31 = vadd.f32 %v907_v0, %v889_v27 }
  0xd1   : > { %v958_v8 = vadd.f32 %v957_v4, %v939_v6  ;;  %v927_v35 = vadd.f32 %v926_v1, %v908_v31 }
  0xd6   : > { %v976_v9 = vpop.f32.mrf.mxu2  ;;  %v940_v14 = vpop.f32.mrf.mxu0 }
  0xd7   : > { %v977_v11 = vadd.f32 %v976_v9, %v958_v8  ;;  %v995_v12 = vpop.f32.mrf.mxu3  ;;  %v959_v15 = vpop.f32.mrf.mxu1  ;;  %v941_v18 = vadd.f32 %v940_v14, %v922_v10 }
  0xd9   : > { %v996_v17 = vadd.f32 %v995_v12, %v977_v11  ;;  %v960_v21 = vadd.f32 %v959_v15, %v941_v18 }
  0xdb   : > { %v1024_v20 = vadd.f32 %v1810_v13, %v996_v17 }
  0xdd   : > { %1028 = vst [vmem:[%s2216_s10] sm:$0xff] %v1024_v20 }
  0xde   : > { %v978_v22 = vpop.f32.mrf.mxu2  ;;  %v943_v26 = vpop.f32.mrf.mxu0 }
  0xdf   : > { %v979_v24 = vadd.f32 %v978_v22, %v960_v21  ;;  %v997_v25 = vpop.f32.mrf.mxu3  ;;  %v944_v29 = vadd.f32 %v943_v26, %v925_v23  ;;  %v962_v30 = vpop.f32.mrf.mxu1 }
  0xe1   : > { %v998_v28 = vadd.f32 %v997_v25, %v979_v24  ;;  %v963_v33 = vadd.f32 %v962_v30, %v944_v29 }
  0xe3   : > { %v1025_v32 = vadd.f32 %v1810_v13, %v998_v28 }
  0xe5   : > { %1029 = vst [vmem:[%s2216_s10 + $0x8] sm:$0xff] %v1025_v32 }
  0xe6   : > { %v981_v34 = vpop.f32.mrf.mxu2  ;;  %v945_v38 = vpop.f32.mrf.mxu0 }
  0xe7   : > { %v982_v36 = vadd.f32 %v981_v34, %v963_v33  ;;  %v1000_v37 = vpop.f32.mrf.mxu3  ;;  %v946_v40 = vadd.f32 %v945_v38, %v927_v35  ;;  %v964_v42 = vpop.f32.mrf.mxu1 }
  0xe9   : > { %v1001_v39 = vadd.f32 %v1000_v37, %v982_v36  ;;  %v965_v43 = vadd.f32 %v964_v42, %v946_v40 }
  0xeb   : > { %v1026_v41 = vadd.f32 %v1810_v13, %v1001_v39 }
  0xed   : > { %1030 = vst [vmem:[%s2216_s10 + $0x10] sm:$0xff] %v1026_v41 }
  0xee   : > { %v983_v44 = vpop.f32.mrf.mxu2 }
  0xef   : > { %v984_v45 = vadd.f32 %v983_v44, %v965_v43  ;;  %v1002_v46 = vpop.f32.mrf.mxu3 }
  0xf1   : > { %v1003_v47 = vadd.f32 %v1002_v46, %v984_v45  ;;  %1038 = sbr.rel (!%p1967_p3) target bundleno = 285 (0x11d), region = 44 }
  0xf3   : > { %v1027_v48 = vadd.f32 %v1810_v13, %v1003_v47 }
  0xf5   : > { %1031 = vst [vmem:[%s2216_s10 + $0x18] sm:$0xff] %v1027_v48 }
  0xf6   : > { %s2298_s12 = smov (!%p1041_p9, %s1040_s12), 4 }
  0xf7   : > { %s1607_s23 = sshll.u32 %s2298_s12, 3 }
  0xf8   : > { %p1610_p10 = scmp.eq.s32.totalorder %s1607_s23, 0 }
  0xf9   : > { %s2235_s25 = sshrl.u32 (!%p1610_p10), %s2298_s12, 2 }
  0xfa   : > { %1049 = sbr.rel (%p1610_p10) target bundleno = 285 (0x11d), region = 48  ;;  %p1611_p11 = scmp.le.s32.totalorder (!%p1610_p10), %s2235_s25, 0 }
  0xff   : > { %1224 = sbr.rel (%p1611_p11) target bundleno = 268 (0x10c), region = 125  ;;  %s2288_s14 = smov (!%p1611_p11), %s2229_s21 }
 0x100   : > { %s2289_s20 = smov (!%p1611_p11), %s2216_s10  ;;  %s2244_s28 = smov (!%p1611_p11), 0  }
 0x101   : > { %s1895_s26 = smov (!%p1611_p11), 0  }
 0x104 LB: >> { %v1118_v49 = vld [vmem:[%s1889_s20] sm:$0xff]  ;;  %v1120_v50 = vld [vmem:[%s1889_s20 + $0x8] sm:$0xff]  ;;  %v1122_v51 = vld [vmem:[%s1889_s20 + $0x10] sm:$0xff]  ;;  %s1126_s27 = sadd.s32 1, %s1893_s28  ;;  %s1112_s26 = sadd.s32 1, %s1897_s26   ;;  %s1897_s26 = sphi %s1895_s26, %s1112_s26   ;;  %s1893_s28 = sphi %s2244_s28, %s2290_s28   ;;  %s1889_s20 = sphi %s2289_s20, %s1131_s20   ;;  %s1885_s14 = sphi %s2288_s14, %s1132_s14  }
 0x105   : >> { %1119 = vst [vmem:[%s1885_s14] sm:$0xff] %v1118_v49  ;;  %v1124_v52 = vld [vmem:[%s1889_s20 + $0x18] sm:$0xff]  ;;  %p1127_p12 = scmp.ge.s32.totalorder %s1126_s27, %s2235_s25  ;;  %p1111_p13 = scmp.ge.s32.totalorder %s1112_s26, %s2235_s25 }
 0x106   : >> { %1121 = vst [vmem:[%s1885_s14 + $0x8] sm:$0xff] %v1120_v50 }
 0x107   : >> { %1123 = vst [vmem:[%s1885_s14 + $0x10] sm:$0xff] %v1122_v51  ;;  %s2300_s27 = smov (%p1127_p12, %s1126_s27), 0  ;;  %1114 = sbr.rel (!%p1111_p13) target bundleno = 260 (0x104), region = 131 }
 0x108   : >> { %1125 = vst [vmem:[%s1885_s14 + $0x18] sm:$0xff] %v1124_v52  ;;  %s1612_s29 = sshll.u32 %s2300_s27, 5  ;;  %s2290_s28 = smov %s2300_s27 }
 0x109   : >> { %s1131_s20 = scalar_lea.vmem %s2216_s10, %s1612_s29 [#allocation3]   ;;  %s1132_s14 = scalar_lea.vmem %s2229_s21, %s1612_s29  }
 0x10c PF: > { %s2260_s30 = sand.u32 3, %s2298_s12   ;;  %s1704_s4 = sshll.u32 %s2235_s25, 5 }
 0x10d   : > { %s1137_s5 = scalar_lea.vmem %s2216_s10, %s1704_s4 [#allocation3]   ;;  %s1139_s6 = scalar_lea.vmem %s2229_s21, %s1704_s4  }
 0x10e   : > { %p1617_p0 = scmp.le.s32.totalorder %s2260_s30, 0 }
 0x10f   : > { %s1899_s24 = smov (!%p1617_p0), %s1139_s6   ;;  %s1903_s7 = smov (!%p1617_p0), %s1137_s5  }
 0x110   : > { %1238 = sbr.rel (%p1617_p0) target bundleno = 285 (0x11d), region = 136  ;;  %s1907_s8 = smov (!%p1617_p0), 0  }
 0x111   : > { %s1911_s9 = smov (!%p1617_p0), 0  }
 0x115 LB: >> { %v1149_v53 = vld [vmem:[%s1905_s7] sm:$0xff]  ;;  %s1151_s12 = sadd.s32 1, %s1909_s8  ;;  %s1143_s9 = sadd.s32 1, %s1913_s9   ;;  %s1913_s9 = sphi %s1911_s9, %s1143_s9   ;;  %s1909_s8 = sphi %s1907_s8, %s1908_s8   ;;  %s1905_s7 = sphi %s1903_s7, %s1156_s7   ;;  %s1901_s24 = sphi %s1899_s24, %s1157_s24  }
 0x116   : >> { %1150 = vst [vmem:[%s1901_s24] sm:$0xff] %v1149_v53  ;;  %p1152_p1 = scmp.ge.s32.totalorder %s1151_s12, %s2260_s30  ;;  %p1142_p2 = scmp.ge.s32.totalorder %s1143_s9, %s2260_s30 }
 0x118   : >> { %s2302_s12 = smov (%p1152_p1, %s1151_s12), 0  ;;  %1145 = sbr.rel (!%p1142_p2) target bundleno = 277 (0x115), region = 142 }
 0x119   : >> { %s1618_s10 = sshll.u32 %s2302_s12, 3  ;;  %s1908_s8 = smov %s2302_s12  }
 0x11a   : >> { %s1156_s7 = scalar_lea.vmem %s1137_s5, %s1618_s10 [#allocation3]   ;;  %s1157_s24 = scalar_lea.vmem %s1139_s6, %s1618_s10  }
 0x11d PF: > { %s13_s16 = sadd.s32 1, %s1881_s16   ;;  %s2291_s12 = smov %s1869_s13 }
 0x11e   : > { %p10_p3 = scmp.ge.s32.totalorder %s13_s16, 4   ;;  %s2292_s13 = smov %s1976_s22 }
 0x11f   : > { %s2293_s14 = smov %s1877_s15  ;;  %s2294_s15 = smov %s2296_s18 }
 0x120   :  { %12 = sbr.rel (!%p10_p3) target bundleno = 3 (0x3), region = 153 }

</bundles_post_ra>
